<compile_context>
chip_gen: v7x
topology: tpu7x:2x2x1
jax: 0.10.0
libtpu: 0.0.40
codegen_flags: <defaults>
</compile_context>

<pallas_src>
import functools

import jax
import jax.numpy as jnp
from jax import lax
from jax.experimental import pallas as pl
from jax.experimental.pallas import tpu as pltpu


def _conv_branch_kernel(x_ref, w_ref, g_ref, be_ref, out_ref, *,
                        K, d, C, O, T_out, Bm, Bpad, hidP, is_pool, eps):
    """Lane-dense fused conv + BN + adaptive max-pool.

    x_ref  : VMEM (C, T, Bpad)   batch*width folded (+ zero padded) into lanes
    w_ref  : SMEM (O*C*K,)       conv weights, flat, PyTorch (O, C, K) order
    g_ref  : SMEM (O,)           BN gamma
    be_ref : SMEM (O,)           BN beta
    out_ref: VMEM (O*hidP, Bpad) (or (O*T_out, Bpad) if is_pool=False)
    """
    # Hoist the K*C dilated tap slices (each (T_out, Bpad)); shared by every
    # output channel.  No reshapes — slices stay 2-D and lane-dense.
    taps = [x_ref[c, k * d:k * d + T_out, :]
            for k in range(K) for c in range(C)]

    # Valid-lane mask: the last Bpad - Bm lanes are zero padding.
    col = lax.broadcasted_iota(jnp.int32, (T_out, Bpad), 1)
    mask = (col < Bm).astype(jnp.float32)
    inv_n = 1.0 / float(T_out * Bm)

    for o in range(O):
        # ---- (K,1) dilated conv for output channel o: K*C broadcast FMAs (VPU).
        # Conv bias intentionally omitted (cancels under training-mode BN).
        acc = jnp.zeros((T_out, Bpad), jnp.float32)
        for k in range(K):
            for c in range(C):
                w = w_ref[(o * C + c) * K + k]            # SMEM scalar
                acc = acc + w * taps[k * C + c]

        # ---- training-mode BatchNorm2d: biased stats over (B, T_out, m),
        # centered two-pass, padding masked out.
        mean = jnp.sum(acc * mask, keepdims=True) * inv_n          # (1, 1)
        yc = acc - mean
        var = jnp.sum(yc * yc * mask, keepdims=True) * inv_n       # (1, 1)
        scale = g_ref[o] * lax.rsqrt(var + eps)
        z = yc * scale + be_ref[o]                                 # (T_out, Bpad)

        # ---- AdaptiveMaxPool2d((hidP, m)): width is identity, pool over T only.
        if is_pool:
            for p in range(hidP):
                s = (p * T_out) // hidP
                e = -((-(p + 1) * T_out) // hidP)                  # ceil
                r = o * hidP + p
                out_ref[r:r + 1, :] = jnp.max(z[s:e, :], axis=0, keepdims=True)
        else:
            out_ref[o * T_out:(o + 1) * T_out, :] = z


def conv_branch_forward(x, weight, bias, gamma, beta, *, kernel_size,
                        dilation, hidP=1, is_pool=True, eps=1e-5):
    """x: (B, C_in, T, m); weight: (C_out, C_in, K); bias/gamma/beta: (C_out,).

    Returns (B, C_out*hidP, m) (or (B, C_out*T_out, m) if is_pool=False).
    """
    del bias  # exactly cancelled by training-mode BatchNorm (see header).
    B, C, T, m = x.shape
    O = weight.shape[0]
    K = kernel_size
    d = dilation
    T_out = T - d * (K - 1)
    assert T_out >= 1, "kernel/dilation too large for T"
    if is_pool:
        assert hidP <= T_out, "adaptive pool bins exceed conv output length"
    Bm = B * m
    Bpad = max(128, ((Bm + 127) // 128) * 128)        # lane-dense minor dim
    pool_bins = hidP if is_pool else T_out
    out_rows = O * pool_bins

    # Layout plumbing (negligible vs. kernel at these shapes):
    # x (B, C, T, m) -> (C, T, B*m), zero-padded on the lane axis to Bpad.
    xt = jnp.transpose(x, (1, 2, 0, 3)).reshape(C, T, Bm).astype(jnp.float32)
    xt = jnp.pad(xt, ((0, 0), (0, 0), (0, Bpad - Bm)))
    w_flat = weight.astype(jnp.float32).reshape(-1)   # (O*C*K,), PyTorch order
    gamma_f = gamma.astype(jnp.float32)
    beta_f = beta.astype(jnp.float32)

    kernel = functools.partial(
        _conv_branch_kernel, K=K, d=d, C=C, O=O, T_out=T_out, Bm=Bm,
        Bpad=Bpad, hidP=hidP, is_pool=is_pool, eps=eps)

    out2 = pl.pallas_call(
        kernel,
        out_shape=jax.ShapeDtypeStruct((out_rows, Bpad), jnp.float32),
        in_specs=[
            pl.BlockSpec(memory_space=pltpu.MemorySpace.VMEM),   # x (whole array)
            pl.BlockSpec(memory_space=pltpu.MemorySpace.SMEM),   # conv weights
            pl.BlockSpec(memory_space=pltpu.MemorySpace.SMEM),   # BN gamma
            pl.BlockSpec(memory_space=pltpu.MemorySpace.SMEM),   # BN beta
        ],
        out_specs=pl.BlockSpec(memory_space=pltpu.MemorySpace.VMEM),
        compiler_params=pltpu.CompilerParams(
            vmem_limit_bytes=32 * 1024 * 1024),
    )(xt, w_flat, gamma_f, beta_f)

    # Kernel rows are ordered (o * pool_bins + p) which already matches
    # torch's (B, O, pool_bins, m).view(B, -1, m); drop the lane padding and
    # unfold B back out of the lane axis.
    out = out2[:, :Bm].reshape(out_rows, B, m).transpose(1, 0, 2)
    return out


def _reference(x, weight, bias, gamma, beta, *, kernel_size, dilation,
               hidP, eps=1e-5):
    """Pure-JAX reference mirroring the PyTorch module (training-mode BN)."""
    O, C, K = weight.shape
    d = dilation
    y = jax.lax.conv_general_dilated(
        x, weight.reshape(O, C, K, 1),
        window_strides=(1, 1), padding="VALID",
        rhs_dilation=(d, 1),
        dimension_numbers=("NCHW", "OIHW", "NCHW"))
    y = y + bias.reshape(1, O, 1, 1)
    mean = jnp.mean(y, axis=(0, 2, 3), keepdims=True)
    var = jnp.mean((y - mean) ** 2, axis=(0, 2, 3), keepdims=True)
    y = (y - mean) * jax.lax.rsqrt(var + eps)
    y = y * gamma.reshape(1, O, 1, 1) + beta.reshape(1, O, 1, 1)
    T_out = y.shape[2]
    pooled = []
    for p in range(hidP):
        s = (p * T_out) // hidP
        e = -((-(p + 1) * T_out) // hidP)
        pooled.append(jnp.max(y[:, :, s:e, :], axis=2))
    y = jnp.stack(pooled, axis=2)                      # (B, O, hidP, m)
    return y.reshape(y.shape[0], -1, y.shape[-1])


if __name__ == "__main__":
    # Shapes consistent with ConvBranch(m=16, in_channels=4, out_channels=8,
    # kernel_size=3, dilation_factor=2, hidP=1).
    B, C_in, C_out, T, m = 2, 4, 8, 16, 16
    K, dil, hidP = 3, 2, 1

    key = jax.random.PRNGKey(0)
    kx, kw, kb, kg, ke = jax.random.split(key, 5)
    x = jax.random.normal(kx, (B, C_in, T, m), dtype=jnp.float32)
    weight = jax.random.normal(kw, (C_out, C_in, K), dtype=jnp.float32) * 0.1
    bias = jax.random.normal(kb, (C_out,), dtype=jnp.float32) * 0.1
    gamma = 1.0 + 0.1 * jax.random.normal(kg, (C_out,), dtype=jnp.float32)
    beta = 0.1 * jax.random.normal(ke, (C_out,), dtype=jnp.float32)

    fwd = functools.partial(conv_branch_forward, kernel_size=K, dilation=dil,
                            hidP=hidP, is_pool=True)
    out = jax.block_until_ready(fwd(x, weight, bias, gamma, beta))

    ref = _reference(x, weight, bias, gamma, beta, kernel_size=K,
                     dilation=dil, hidP=hidP)
    assert out.shape == (B, C_out * hidP, m), out.shape
    max_err = float(jnp.max(jnp.abs(out - ref)))
    assert jnp.allclose(out, ref, atol=1e-4, rtol=1e-4), max_err
    print("KERNEL_OK")
</pallas_src>

<mosaic_0001>
module attributes {stable_mosaic.version = 11 : i64} {
  func.func @_conv_branch_kernel(%arg0: memref<4x16x128xf32, #tpu.memory_space<vmem>>, %arg1: memref<96xf32, #tpu.memory_space<smem>>, %arg2: memref<8xf32, #tpu.memory_space<smem>>, %arg3: memref<8xf32, #tpu.memory_space<smem>>, %arg4: memref<8x128xf32, #tpu.memory_space<vmem>>) attributes {dimension_semantics = [], scalar_prefetch = 0 : i64, scratch_operands = 0 : i64, tpu.core_type = #tpu.core_type<tc>} {
    %c0 = arith.constant 0 : index
    %c0_0 = arith.constant 0 : index
    %c0_1 = arith.constant 0 : index
    %0 = vector.load %arg0[%c0, %c0_0, %c0_1] : memref<4x16x128xf32, #tpu.memory_space<vmem>>, vector<1x12x128xf32>
    %1 = vector.shape_cast %0 : vector<1x12x128xf32> to vector<12x128xf32>
    %c1 = arith.constant 1 : index
    %c0_2 = arith.constant 0 : index
    %c0_3 = arith.constant 0 : index
    %2 = vector.load %arg0[%c1, %c0_2, %c0_3] : memref<4x16x128xf32, #tpu.memory_space<vmem>>, vector<1x12x128xf32>
    %3 = vector.shape_cast %2 : vector<1x12x128xf32> to vector<12x128xf32>
    %c2 = arith.constant 2 : index
    %c0_4 = arith.constant 0 : index
    %c0_5 = arith.constant 0 : index
    %4 = vector.load %arg0[%c2, %c0_4, %c0_5] : memref<4x16x128xf32, #tpu.memory_space<vmem>>, vector<1x12x128xf32>
    %5 = vector.shape_cast %4 : vector<1x12x128xf32> to vector<12x128xf32>
    %c3 = arith.constant 3 : index
    %c0_6 = arith.constant 0 : index
    %c0_7 = arith.constant 0 : index
    %6 = vector.load %arg0[%c3, %c0_6, %c0_7] : memref<4x16x128xf32, #tpu.memory_space<vmem>>, vector<1x12x128xf32>
    %7 = vector.shape_cast %6 : vector<1x12x128xf32> to vector<12x128xf32>
    %c0_8 = arith.constant 0 : index
    %c2_9 = arith.constant 2 : index
    %c0_10 = arith.constant 0 : index
    %8 = vector.load %arg0[%c0_8, %c2_9, %c0_10] : memref<4x16x128xf32, #tpu.memory_space<vmem>>, vector<1x12x128xf32>
    %9 = vector.shape_cast %8 : vector<1x12x128xf32> to vector<12x128xf32>
    %c1_11 = arith.constant 1 : index
    %c2_12 = arith.constant 2 : index
    %c0_13 = arith.constant 0 : index
    %10 = vector.load %arg0[%c1_11, %c2_12, %c0_13] : memref<4x16x128xf32, #tpu.memory_space<vmem>>, vector<1x12x128xf32>
    %11 = vector.shape_cast %10 : vector<1x12x128xf32> to vector<12x128xf32>
    %c2_14 = arith.constant 2 : index
    %c2_15 = arith.constant 2 : index
    %c0_16 = arith.constant 0 : index
    %12 = vector.load %arg0[%c2_14, %c2_15, %c0_16] : memref<4x16x128xf32, #tpu.memory_space<vmem>>, vector<1x12x128xf32>
    %13 = vector.shape_cast %12 : vector<1x12x128xf32> to vector<12x128xf32>
    %c3_17 = arith.constant 3 : index
    %c2_18 = arith.constant 2 : index
    %c0_19 = arith.constant 0 : index
    %14 = vector.load %arg0[%c3_17, %c2_18, %c0_19] : memref<4x16x128xf32, #tpu.memory_space<vmem>>, vector<1x12x128xf32>
    %15 = vector.shape_cast %14 : vector<1x12x128xf32> to vector<12x128xf32>
    %c0_20 = arith.constant 0 : index
    %c4 = arith.constant 4 : index
    %c0_21 = arith.constant 0 : index
    %16 = vector.load %arg0[%c0_20, %c4, %c0_21] : memref<4x16x128xf32, #tpu.memory_space<vmem>>, vector<1x12x128xf32>
    %17 = vector.shape_cast %16 : vector<1x12x128xf32> to vector<12x128xf32>
    %c1_22 = arith.constant 1 : index
    %c4_23 = arith.constant 4 : index
    %c0_24 = arith.constant 0 : index
    %18 = vector.load %arg0[%c1_22, %c4_23, %c0_24] : memref<4x16x128xf32, #tpu.memory_space<vmem>>, vector<1x12x128xf32>
    %19 = vector.shape_cast %18 : vector<1x12x128xf32> to vector<12x128xf32>
    %c2_25 = arith.constant 2 : index
    %c4_26 = arith.constant 4 : index
    %c0_27 = arith.constant 0 : index
    %20 = vector.load %arg0[%c2_25, %c4_26, %c0_27] : memref<4x16x128xf32, #tpu.memory_space<vmem>>, vector<1x12x128xf32>
    %21 = vector.shape_cast %20 : vector<1x12x128xf32> to vector<12x128xf32>
    %c3_28 = arith.constant 3 : index
    %c4_29 = arith.constant 4 : index
    %c0_30 = arith.constant 0 : index
    %22 = vector.load %arg0[%c3_28, %c4_29, %c0_30] : memref<4x16x128xf32, #tpu.memory_space<vmem>>, vector<1x12x128xf32>
    %23 = vector.shape_cast %22 : vector<1x12x128xf32> to vector<12x128xf32>
    %24 = tpu.iota {dimensions = array<i32: 1>} : vector<12x128xi32>
    %c32_i32 = arith.constant 32 : i32
    %25 = vector.broadcast %c32_i32 : i32 to vector<12x128xi32>
    %26 = arith.cmpi slt, %24, %25 : vector<12x128xi32>
    %27 = arith.extui %26 : vector<12x128xi1> to vector<12x128xi32>
    %28 = arith.sitofp %27 : vector<12x128xi32> to vector<12x128xf32>
    %cst = arith.constant 0.000000e+00 : f32
    %29 = vector.broadcast %cst : f32 to vector<12x128xf32>
    %c0_31 = arith.constant 0 : index
    %30 = memref.load %arg1[%c0_31] : memref<96xf32, #tpu.memory_space<smem>>
    %31 = vector.broadcast %30 : f32 to vector<12x128xf32>
    %32 = arith.mulf %31, %1 : vector<12x128xf32>
    %33 = arith.addf %29, %32 : vector<12x128xf32>
    %c3_32 = arith.constant 3 : index
    %34 = memref.load %arg1[%c3_32] : memref<96xf32, #tpu.memory_space<smem>>
    %35 = vector.broadcast %34 : f32 to vector<12x128xf32>
    %36 = arith.mulf %35, %3 : vector<12x128xf32>
    %37 = arith.addf %33, %36 : vector<12x128xf32>
    %c6 = arith.constant 6 : index
    %38 = memref.load %arg1[%c6] : memref<96xf32, #tpu.memory_space<smem>>
    %39 = vector.broadcast %38 : f32 to vector<12x128xf32>
    %40 = arith.mulf %39, %5 : vector<12x128xf32>
    %41 = arith.addf %37, %40 : vector<12x128xf32>
    %c9 = arith.constant 9 : index
    %42 = memref.load %arg1[%c9] : memref<96xf32, #tpu.memory_space<smem>>
    %43 = vector.broadcast %42 : f32 to vector<12x128xf32>
    %44 = arith.mulf %43, %7 : vector<12x128xf32>
    %45 = arith.addf %41, %44 : vector<12x128xf32>
    %c1_33 = arith.constant 1 : index
    %46 = memref.load %arg1[%c1_33] : memref<96xf32, #tpu.memory_space<smem>>
    %47 = vector.broadcast %46 : f32 to vector<12x128xf32>
    %48 = arith.mulf %47, %9 : vector<12x128xf32>
    %49 = arith.addf %45, %48 : vector<12x128xf32>
    %c4_34 = arith.constant 4 : index
    %50 = memref.load %arg1[%c4_34] : memref<96xf32, #tpu.memory_space<smem>>
    %51 = vector.broadcast %50 : f32 to vector<12x128xf32>
    %52 = arith.mulf %51, %11 : vector<12x128xf32>
    %53 = arith.addf %49, %52 : vector<12x128xf32>
    %c7 = arith.constant 7 : index
    %54 = memref.load %arg1[%c7] : memref<96xf32, #tpu.memory_space<smem>>
    %55 = vector.broadcast %54 : f32 to vector<12x128xf32>
    %56 = arith.mulf %55, %13 : vector<12x128xf32>
    %57 = arith.addf %53, %56 : vector<12x128xf32>
    %c10 = arith.constant 10 : index
    %58 = memref.load %arg1[%c10] : memref<96xf32, #tpu.memory_space<smem>>
    %59 = vector.broadcast %58 : f32 to vector<12x128xf32>
    %60 = arith.mulf %59, %15 : vector<12x128xf32>
    %61 = arith.addf %57, %60 : vector<12x128xf32>
    %c2_35 = arith.constant 2 : index
    %62 = memref.load %arg1[%c2_35] : memref<96xf32, #tpu.memory_space<smem>>
    %63 = vector.broadcast %62 : f32 to vector<12x128xf32>
    %64 = arith.mulf %63, %17 : vector<12x128xf32>
    %65 = arith.addf %61, %64 : vector<12x128xf32>
    %c5 = arith.constant 5 : index
    %66 = memref.load %arg1[%c5] : memref<96xf32, #tpu.memory_space<smem>>
    %67 = vector.broadcast %66 : f32 to vector<12x128xf32>
    %68 = arith.mulf %67, %19 : vector<12x128xf32>
    %69 = arith.addf %65, %68 : vector<12x128xf32>
    %c8 = arith.constant 8 : index
    %70 = memref.load %arg1[%c8] : memref<96xf32, #tpu.memory_space<smem>>
    %71 = vector.broadcast %70 : f32 to vector<12x128xf32>
    %72 = arith.mulf %71, %21 : vector<12x128xf32>
    %73 = arith.addf %69, %72 : vector<12x128xf32>
    %c11 = arith.constant 11 : index
    %74 = memref.load %arg1[%c11] : memref<96xf32, #tpu.memory_space<smem>>
    %75 = vector.broadcast %74 : f32 to vector<12x128xf32>
    %76 = arith.mulf %75, %23 : vector<12x128xf32>
    %77 = arith.addf %73, %76 : vector<12x128xf32>
    %78 = arith.mulf %77, %28 : vector<12x128xf32>
    %79 = vector.shape_cast %78 : vector<12x128xf32> to vector<1x12x128xf32>
    %cst_36 = arith.constant dense<0.000000e+00> : vector<1xf32>
    %80 = vector.multi_reduction <add>, %79, %cst_36 [1, 2] : vector<1x12x128xf32> to vector<1xf32>
    %81 = vector.shape_cast %80 : vector<1xf32> to vector<1x1x1xf32>
    %82 = vector.extract %81[0, 0, 0] : f32 from vector<1x1x1xf32>
    %83 = vector.broadcast %82 : f32 to vector<1x1xf32>
    %cst_37 = arith.constant 0.00260416674 : f32
    %84 = vector.broadcast %cst_37 : f32 to vector<1x1xf32>
    %85 = arith.mulf %83, %84 : vector<1x1xf32>
    %86 = vector.broadcast %85 : vector<1x1xf32> to vector<12x128xf32>
    %87 = arith.subf %77, %86 : vector<12x128xf32>
    %88 = arith.mulf %87, %87 : vector<12x128xf32>
    %89 = arith.mulf %88, %28 : vector<12x128xf32>
    %90 = vector.shape_cast %89 : vector<12x128xf32> to vector<1x12x128xf32>
    %cst_38 = arith.constant dense<0.000000e+00> : vector<1xf32>
    %91 = vector.multi_reduction <add>, %90, %cst_38 [1, 2] : vector<1x12x128xf32> to vector<1xf32>
    %92 = vector.shape_cast %91 : vector<1xf32> to vector<1x1x1xf32>
    %93 = vector.extract %92[0, 0, 0] : f32 from vector<1x1x1xf32>
    %94 = vector.broadcast %93 : f32 to vector<1x1xf32>
    %cst_39 = arith.constant 0.00260416674 : f32
    %95 = vector.broadcast %cst_39 : f32 to vector<1x1xf32>
    %96 = arith.mulf %94, %95 : vector<1x1xf32>
    %c0_40 = arith.constant 0 : index
    %97 = memref.load %arg2[%c0_40] : memref<8xf32, #tpu.memory_space<smem>>
    %cst_41 = arith.constant 9.99999974E-6 : f32
    %98 = vector.broadcast %cst_41 : f32 to vector<1x1xf32>
    %99 = arith.addf %96, %98 : vector<1x1xf32>
    %100 = math.rsqrt %99 : vector<1x1xf32>
    %101 = vector.broadcast %97 : f32 to vector<1x1xf32>
    %102 = arith.mulf %101, %100 : vector<1x1xf32>
    %103 = vector.broadcast %102 : vector<1x1xf32> to vector<12x128xf32>
    %104 = arith.mulf %87, %103 : vector<12x128xf32>
    %c0_42 = arith.constant 0 : index
    %105 = memref.load %arg3[%c0_42] : memref<8xf32, #tpu.memory_space<smem>>
    %106 = vector.broadcast %105 : f32 to vector<12x128xf32>
    %107 = arith.addf %104, %106 : vector<12x128xf32>
    %cst_43 = arith.constant dense<0xFF800000> : vector<128xf32>
    %108 = vector.multi_reduction <maximumf>, %107, %cst_43 [0] : vector<12x128xf32> to vector<128xf32>
    %109 = vector.shape_cast %108 : vector<128xf32> to vector<1x128xf32>
    %c0_44 = arith.constant 0 : index
    %c0_45 = arith.constant 0 : index
    %110 = vector.load %arg4[%c0_44, %c0_45] : memref<8x128xf32, #tpu.memory_space<vmem>>, vector<1x128xf32>
    tpu.vector_store %arg4[%c0_44, %c0_45], %109 {strides = array<i32>} : memref<8x128xf32, #tpu.memory_space<vmem>>, vector<1x128xf32>,
    %cst_46 = arith.constant 0.000000e+00 : f32
    %111 = vector.broadcast %cst_46 : f32 to vector<12x128xf32>
    %c12 = arith.constant 12 : index
    %112 = memref.load %arg1[%c12] : memref<96xf32, #tpu.memory_space<smem>>
    %113 = vector.broadcast %112 : f32 to vector<12x128xf32>
    %114 = arith.mulf %113, %1 : vector<12x128xf32>
    %115 = arith.addf %111, %114 : vector<12x128xf32>
    %c15 = arith.constant 15 : index
    %116 = memref.load %arg1[%c15] : memref<96xf32, #tpu.memory_space<smem>>
    %117 = vector.broadcast %116 : f32 to vector<12x128xf32>
    %118 = arith.mulf %117, %3 : vector<12x128xf32>
    %119 = arith.addf %115, %118 : vector<12x128xf32>
    %c18 = arith.constant 18 : index
    %120 = memref.load %arg1[%c18] : memref<96xf32, #tpu.memory_space<smem>>
    %121 = vector.broadcast %120 : f32 to vector<12x128xf32>
    %122 = arith.mulf %121, %5 : vector<12x128xf32>
    %123 = arith.addf %119, %122 : vector<12x128xf32>
    %c21 = arith.constant 21 : index
    %124 = memref.load %arg1[%c21] : memref<96xf32, #tpu.memory_space<smem>>
    %125 = vector.broadcast %124 : f32 to vector<12x128xf32>
    %126 = arith.mulf %125, %7 : vector<12x128xf32>
    %127 = arith.addf %123, %126 : vector<12x128xf32>
    %c13 = arith.constant 13 : index
    %128 = memref.load %arg1[%c13] : memref<96xf32, #tpu.memory_space<smem>>
    %129 = vector.broadcast %128 : f32 to vector<12x128xf32>
    %130 = arith.mulf %129, %9 : vector<12x128xf32>
    %131 = arith.addf %127, %130 : vector<12x128xf32>
    %c16 = arith.constant 16 : index
    %132 = memref.load %arg1[%c16] : memref<96xf32, #tpu.memory_space<smem>>
    %133 = vector.broadcast %132 : f32 to vector<12x128xf32>
    %134 = arith.mulf %133, %11 : vector<12x128xf32>
    %135 = arith.addf %131, %134 : vector<12x128xf32>
    %c19 = arith.constant 19 : index
    %136 = memref.load %arg1[%c19] : memref<96xf32, #tpu.memory_space<smem>>
    %137 = vector.broadcast %136 : f32 to vector<12x128xf32>
    %138 = arith.mulf %137, %13 : vector<12x128xf32>
    %139 = arith.addf %135, %138 : vector<12x128xf32>
    %c22 = arith.constant 22 : index
    %140 = memref.load %arg1[%c22] : memref<96xf32, #tpu.memory_space<smem>>
    %141 = vector.broadcast %140 : f32 to vector<12x128xf32>
    %142 = arith.mulf %141, %15 : vector<12x128xf32>
    %143 = arith.addf %139, %142 : vector<12x128xf32>
    %c14 = arith.constant 14 : index
    %144 = memref.load %arg1[%c14] : memref<96xf32, #tpu.memory_space<smem>>
    %145 = vector.broadcast %144 : f32 to vector<12x128xf32>
    %146 = arith.mulf %145, %17 : vector<12x128xf32>
    %147 = arith.addf %143, %146 : vector<12x128xf32>
    %c17 = arith.constant 17 : index
    %148 = memref.load %arg1[%c17] : memref<96xf32, #tpu.memory_space<smem>>
    %149 = vector.broadcast %148 : f32 to vector<12x128xf32>
    %150 = arith.mulf %149, %19 : vector<12x128xf32>
    %151 = arith.addf %147, %150 : vector<12x128xf32>
    %c20 = arith.constant 20 : index
    %152 = memref.load %arg1[%c20] : memref<96xf32, #tpu.memory_space<smem>>
    %153 = vector.broadcast %152 : f32 to vector<12x128xf32>
    %154 = arith.mulf %153, %21 : vector<12x128xf32>
    %155 = arith.addf %151, %154 : vector<12x128xf32>
    %c23 = arith.constant 23 : index
    %156 = memref.load %arg1[%c23] : memref<96xf32, #tpu.memory_space<smem>>
    %157 = vector.broadcast %156 : f32 to vector<12x128xf32>
    %158 = arith.mulf %157, %23 : vector<12x128xf32>
    %159 = arith.addf %155, %158 : vector<12x128xf32>
    %160 = arith.mulf %159, %28 : vector<12x128xf32>
    %161 = vector.shape_cast %160 : vector<12x128xf32> to vector<1x12x128xf32>
    %cst_47 = arith.constant dense<0.000000e+00> : vector<1xf32>
    %162 = vector.multi_reduction <add>, %161, %cst_47 [1, 2] : vector<1x12x128xf32> to vector<1xf32>
    %163 = vector.shape_cast %162 : vector<1xf32> to vector<1x1x1xf32>
    %164 = vector.extract %163[0, 0, 0] : f32 from vector<1x1x1xf32>
    %165 = vector.broadcast %164 : f32 to vector<1x1xf32>
    %cst_48 = arith.constant 0.00260416674 : f32
    %166 = vector.broadcast %cst_48 : f32 to vector<1x1xf32>
    %167 = arith.mulf %165, %166 : vector<1x1xf32>
    %168 = vector.broadcast %167 : vector<1x1xf32> to vector<12x128xf32>
    %169 = arith.subf %159, %168 : vector<12x128xf32>
    %170 = arith.mulf %169, %169 : vector<12x128xf32>
    %171 = arith.mulf %170, %28 : vector<12x128xf32>
    %172 = vector.shape_cast %171 : vector<12x128xf32> to vector<1x12x128xf32>
    %cst_49 = arith.constant dense<0.000000e+00> : vector<1xf32>
    %173 = vector.multi_reduction <add>, %172, %cst_49 [1, 2] : vector<1x12x128xf32> to vector<1xf32>
    %174 = vector.shape_cast %173 : vector<1xf32> to vector<1x1x1xf32>
    %175 = vector.extract %174[0, 0, 0] : f32 from vector<1x1x1xf32>
    %176 = vector.broadcast %175 : f32 to vector<1x1xf32>
    %cst_50 = arith.constant 0.00260416674 : f32
    %177 = vector.broadcast %cst_50 : f32 to vector<1x1xf32>
    %178 = arith.mulf %176, %177 : vector<1x1xf32>
    %c1_51 = arith.constant 1 : index
    %179 = memref.load %arg2[%c1_51] : memref<8xf32, #tpu.memory_space<smem>>
    %cst_52 = arith.constant 9.99999974E-6 : f32
    %180 = vector.broadcast %cst_52 : f32 to vector<1x1xf32>
    %181 = arith.addf %178, %180 : vector<1x1xf32>
    %182 = math.rsqrt %181 : vector<1x1xf32>
    %183 = vector.broadcast %179 : f32 to vector<1x1xf32>
    %184 = arith.mulf %183, %182 : vector<1x1xf32>
    %185 = vector.broadcast %184 : vector<1x1xf32> to vector<12x128xf32>
    %186 = arith.mulf %169, %185 : vector<12x128xf32>
    %c1_53 = arith.constant 1 : index
    %187 = memref.load %arg3[%c1_53] : memref<8xf32, #tpu.memory_space<smem>>
    %188 = vector.broadcast %187 : f32 to vector<12x128xf32>
    %189 = arith.addf %186, %188 : vector<12x128xf32>
    %cst_54 = arith.constant dense<0xFF800000> : vector<128xf32>
    %190 = vector.multi_reduction <maximumf>, %189, %cst_54 [0] : vector<12x128xf32> to vector<128xf32>
    %191 = vector.shape_cast %190 : vector<128xf32> to vector<1x128xf32>
    %c1_55 = arith.constant 1 : index
    %c0_56 = arith.constant 0 : index
    %192 = vector.load %arg4[%c1_55, %c0_56] : memref<8x128xf32, #tpu.memory_space<vmem>>, vector<1x128xf32>
    tpu.vector_store %arg4[%c1_55, %c0_56], %191 {strides = array<i32>} : memref<8x128xf32, #tpu.memory_space<vmem>>, vector<1x128xf32>,
    %cst_57 = arith.constant 0.000000e+00 : f32
    %193 = vector.broadcast %cst_57 : f32 to vector<12x128xf32>
    %c24 = arith.constant 24 : index
    %194 = memref.load %arg1[%c24] : memref<96xf32, #tpu.memory_space<smem>>
    %195 = vector.broadcast %194 : f32 to vector<12x128xf32>
    %196 = arith.mulf %195, %1 : vector<12x128xf32>
    %197 = arith.addf %193, %196 : vector<12x128xf32>
    %c27 = arith.constant 27 : index
    %198 = memref.load %arg1[%c27] : memref<96xf32, #tpu.memory_space<smem>>
    %199 = vector.broadcast %198 : f32 to vector<12x128xf32>
    %200 = arith.mulf %199, %3 : vector<12x128xf32>
    %201 = arith.addf %197, %200 : vector<12x128xf32>
    %c30 = arith.constant 30 : index
    %202 = memref.load %arg1[%c30] : memref<96xf32, #tpu.memory_space<smem>>
    %203 = vector.broadcast %202 : f32 to vector<12x128xf32>
    %204 = arith.mulf %203, %5 : vector<12x128xf32>
    %205 = arith.addf %201, %204 : vector<12x128xf32>
    %c33 = arith.constant 33 : index
    %206 = memref.load %arg1[%c33] : memref<96xf32, #tpu.memory_space<smem>>
    %207 = vector.broadcast %206 : f32 to vector<12x128xf32>
    %208 = arith.mulf %207, %7 : vector<12x128xf32>
    %209 = arith.addf %205, %208 : vector<12x128xf32>
    %c25 = arith.constant 25 : index
    %210 = memref.load %arg1[%c25] : memref<96xf32, #tpu.memory_space<smem>>
    %211 = vector.broadcast %210 : f32 to vector<12x128xf32>
    %212 = arith.mulf %211, %9 : vector<12x128xf32>
    %213 = arith.addf %209, %212 : vector<12x128xf32>
    %c28 = arith.constant 28 : index
    %214 = memref.load %arg1[%c28] : memref<96xf32, #tpu.memory_space<smem>>
    %215 = vector.broadcast %214 : f32 to vector<12x128xf32>
    %216 = arith.mulf %215, %11 : vector<12x128xf32>
    %217 = arith.addf %213, %216 : vector<12x128xf32>
    %c31 = arith.constant 31 : index
    %218 = memref.load %arg1[%c31] : memref<96xf32, #tpu.memory_space<smem>>
    %219 = vector.broadcast %218 : f32 to vector<12x128xf32>
    %220 = arith.mulf %219, %13 : vector<12x128xf32>
    %221 = arith.addf %217, %220 : vector<12x128xf32>
    %c34 = arith.constant 34 : index
    %222 = memref.load %arg1[%c34] : memref<96xf32, #tpu.memory_space<smem>>
    %223 = vector.broadcast %222 : f32 to vector<12x128xf32>
    %224 = arith.mulf %223, %15 : vector<12x128xf32>
    %225 = arith.addf %221, %224 : vector<12x128xf32>
    %c26 = arith.constant 26 : index
    %226 = memref.load %arg1[%c26] : memref<96xf32, #tpu.memory_space<smem>>
    %227 = vector.broadcast %226 : f32 to vector<12x128xf32>
    %228 = arith.mulf %227, %17 : vector<12x128xf32>
    %229 = arith.addf %225, %228 : vector<12x128xf32>
    %c29 = arith.constant 29 : index
    %230 = memref.load %arg1[%c29] : memref<96xf32, #tpu.memory_space<smem>>
    %231 = vector.broadcast %230 : f32 to vector<12x128xf32>
    %232 = arith.mulf %231, %19 : vector<12x128xf32>
    %233 = arith.addf %229, %232 : vector<12x128xf32>
    %c32 = arith.constant 32 : index
    %234 = memref.load %arg1[%c32] : memref<96xf32, #tpu.memory_space<smem>>
    %235 = vector.broadcast %234 : f32 to vector<12x128xf32>
    %236 = arith.mulf %235, %21 : vector<12x128xf32>
    %237 = arith.addf %233, %236 : vector<12x128xf32>
    %c35 = arith.constant 35 : index
    %238 = memref.load %arg1[%c35] : memref<96xf32, #tpu.memory_space<smem>>
    %239 = vector.broadcast %238 : f32 to vector<12x128xf32>
    %240 = arith.mulf %239, %23 : vector<12x128xf32>
    %241 = arith.addf %237, %240 : vector<12x128xf32>
    %242 = arith.mulf %241, %28 : vector<12x128xf32>
    %243 = vector.shape_cast %242 : vector<12x128xf32> to vector<1x12x128xf32>
    %cst_58 = arith.constant dense<0.000000e+00> : vector<1xf32>
    %244 = vector.multi_reduction <add>, %243, %cst_58 [1, 2] : vector<1x12x128xf32> to vector<1xf32>
    %245 = vector.shape_cast %244 : vector<1xf32> to vector<1x1x1xf32>
    %246 = vector.extract %245[0, 0, 0] : f32 from vector<1x1x1xf32>
    %247 = vector.broadcast %246 : f32 to vector<1x1xf32>
    %cst_59 = arith.constant 0.00260416674 : f32
    %248 = vector.broadcast %cst_59 : f32 to vector<1x1xf32>
    %249 = arith.mulf %247, %248 : vector<1x1xf32>
    %250 = vector.broadcast %249 : vector<1x1xf32> to vector<12x128xf32>
    %251 = arith.subf %241, %250 : vector<12x128xf32>
    %252 = arith.mulf %251, %251 : vector<12x128xf32>
    %253 = arith.mulf %252, %28 : vector<12x128xf32>
    %254 = vector.shape_cast %253 : vector<12x128xf32> to vector<1x12x128xf32>
    %cst_60 = arith.constant dense<0.000000e+00> : vector<1xf32>
    %255 = vector.multi_reduction <add>, %254, %cst_60 [1, 2] : vector<1x12x128xf32> to vector<1xf32>
    %256 = vector.shape_cast %255 : vector<1xf32> to vector<1x1x1xf32>
    %257 = vector.extract %256[0, 0, 0] : f32 from vector<1x1x1xf32>
    %258 = vector.broadcast %257 : f32 to vector<1x1xf32>
    %cst_61 = arith.constant 0.00260416674 : f32
    %259 = vector.broadcast %cst_61 : f32 to vector<1x1xf32>
    %260 = arith.mulf %258, %259 : vector<1x1xf32>
    %c2_62 = arith.constant 2 : index
    %261 = memref.load %arg2[%c2_62] : memref<8xf32, #tpu.memory_space<smem>>
    %cst_63 = arith.constant 9.99999974E-6 : f32
    %262 = vector.broadcast %cst_63 : f32 to vector<1x1xf32>
    %263 = arith.addf %260, %262 : vector<1x1xf32>
    %264 = math.rsqrt %263 : vector<1x1xf32>
    %265 = vector.broadcast %261 : f32 to vector<1x1xf32>
    %266 = arith.mulf %265, %264 : vector<1x1xf32>
    %267 = vector.broadcast %266 : vector<1x1xf32> to vector<12x128xf32>
    %268 = arith.mulf %251, %267 : vector<12x128xf32>
    %c2_64 = arith.constant 2 : index
    %269 = memref.load %arg3[%c2_64] : memref<8xf32, #tpu.memory_space<smem>>
    %270 = vector.broadcast %269 : f32 to vector<12x128xf32>
    %271 = arith.addf %268, %270 : vector<12x128xf32>
    %cst_65 = arith.constant dense<0xFF800000> : vector<128xf32>
    %272 = vector.multi_reduction <maximumf>, %271, %cst_65 [0] : vector<12x128xf32> to vector<128xf32>
    %273 = vector.shape_cast %272 : vector<128xf32> to vector<1x128xf32>
    %c2_66 = arith.constant 2 : index
    %c0_67 = arith.constant 0 : index
    %274 = vector.load %arg4[%c2_66, %c0_67] : memref<8x128xf32, #tpu.memory_space<vmem>>, vector<1x128xf32>
    tpu.vector_store %arg4[%c2_66, %c0_67], %273 {strides = array<i32>} : memref<8x128xf32, #tpu.memory_space<vmem>>, vector<1x128xf32>,
    %cst_68 = arith.constant 0.000000e+00 : f32
    %275 = vector.broadcast %cst_68 : f32 to vector<12x128xf32>
    %c36 = arith.constant 36 : index
    %276 = memref.load %arg1[%c36] : memref<96xf32, #tpu.memory_space<smem>>
    %277 = vector.broadcast %276 : f32 to vector<12x128xf32>
    %278 = arith.mulf %277, %1 : vector<12x128xf32>
    %279 = arith.addf %275, %278 : vector<12x128xf32>
    %c39 = arith.constant 39 : index
    %280 = memref.load %arg1[%c39] : memref<96xf32, #tpu.memory_space<smem>>
    %281 = vector.broadcast %280 : f32 to vector<12x128xf32>
    %282 = arith.mulf %281, %3 : vector<12x128xf32>
    %283 = arith.addf %279, %282 : vector<12x128xf32>
    %c42 = arith.constant 42 : index
    %284 = memref.load %arg1[%c42] : memref<96xf32, #tpu.memory_space<smem>>
    %285 = vector.broadcast %284 : f32 to vector<12x128xf32>
    %286 = arith.mulf %285, %5 : vector<12x128xf32>
    %287 = arith.addf %283, %286 : vector<12x128xf32>
    %c45 = arith.constant 45 : index
    %288 = memref.load %arg1[%c45] : memref<96xf32, #tpu.memory_space<smem>>
    %289 = vector.broadcast %288 : f32 to vector<12x128xf32>
    %290 = arith.mulf %289, %7 : vector<12x128xf32>
    %291 = arith.addf %287, %290 : vector<12x128xf32>
    %c37 = arith.constant 37 : index
    %292 = memref.load %arg1[%c37] : memref<96xf32, #tpu.memory_space<smem>>
    %293 = vector.broadcast %292 : f32 to vector<12x128xf32>
    %294 = arith.mulf %293, %9 : vector<12x128xf32>
    %295 = arith.addf %291, %294 : vector<12x128xf32>
    %c40 = arith.constant 40 : index
    %296 = memref.load %arg1[%c40] : memref<96xf32, #tpu.memory_space<smem>>
    %297 = vector.broadcast %296 : f32 to vector<12x128xf32>
    %298 = arith.mulf %297, %11 : vector<12x128xf32>
    %299 = arith.addf %295, %298 : vector<12x128xf32>
    %c43 = arith.constant 43 : index
    %300 = memref.load %arg1[%c43] : memref<96xf32, #tpu.memory_space<smem>>
    %301 = vector.broadcast %300 : f32 to vector<12x128xf32>
    %302 = arith.mulf %301, %13 : vector<12x128xf32>
    %303 = arith.addf %299, %302 : vector<12x128xf32>
    %c46 = arith.constant 46 : index
    %304 = memref.load %arg1[%c46] : memref<96xf32, #tpu.memory_space<smem>>
    %305 = vector.broadcast %304 : f32 to vector<12x128xf32>
    %306 = arith.mulf %305, %15 : vector<12x128xf32>
    %307 = arith.addf %303, %306 : vector<12x128xf32>
    %c38 = arith.constant 38 : index
    %308 = memref.load %arg1[%c38] : memref<96xf32, #tpu.memory_space<smem>>
    %309 = vector.broadcast %308 : f32 to vector<12x128xf32>
    %310 = arith.mulf %309, %17 : vector<12x128xf32>
    %311 = arith.addf %307, %310 : vector<12x128xf32>
    %c41 = arith.constant 41 : index
    %312 = memref.load %arg1[%c41] : memref<96xf32, #tpu.memory_space<smem>>
    %313 = vector.broadcast %312 : f32 to vector<12x128xf32>
    %314 = arith.mulf %313, %19 : vector<12x128xf32>
    %315 = arith.addf %311, %314 : vector<12x128xf32>
    %c44 = arith.constant 44 : index
    %316 = memref.load %arg1[%c44] : memref<96xf32, #tpu.memory_space<smem>>
    %317 = vector.broadcast %316 : f32 to vector<12x128xf32>
    %318 = arith.mulf %317, %21 : vector<12x128xf32>
    %319 = arith.addf %315, %318 : vector<12x128xf32>
    %c47 = arith.constant 47 : index
    %320 = memref.load %arg1[%c47] : memref<96xf32, #tpu.memory_space<smem>>
    %321 = vector.broadcast %320 : f32 to vector<12x128xf32>
    %322 = arith.mulf %321, %23 : vector<12x128xf32>
    %323 = arith.addf %319, %322 : vector<12x128xf32>
    %324 = arith.mulf %323, %28 : vector<12x128xf32>
    %325 = vector.shape_cast %324 : vector<12x128xf32> to vector<1x12x128xf32>
    %cst_69 = arith.constant dense<0.000000e+00> : vector<1xf32>
    %326 = vector.multi_reduction <add>, %325, %cst_69 [1, 2] : vector<1x12x128xf32> to vector<1xf32>
    %327 = vector.shape_cast %326 : vector<1xf32> to vector<1x1x1xf32>
    %328 = vector.extract %327[0, 0, 0] : f32 from vector<1x1x1xf32>
    %329 = vector.broadcast %328 : f32 to vector<1x1xf32>
    %cst_70 = arith.constant 0.00260416674 : f32
    %330 = vector.broadcast %cst_70 : f32 to vector<1x1xf32>
    %331 = arith.mulf %329, %330 : vector<1x1xf32>
    %332 = vector.broadcast %331 : vector<1x1xf32> to vector<12x128xf32>
    %333 = arith.subf %323, %332 : vector<12x128xf32>
    %334 = arith.mulf %333, %333 : vector<12x128xf32>
    %335 = arith.mulf %334, %28 : vector<12x128xf32>
    %336 = vector.shape_cast %335 : vector<12x128xf32> to vector<1x12x128xf32>
    %cst_71 = arith.constant dense<0.000000e+00> : vector<1xf32>
    %337 = vector.multi_reduction <add>, %336, %cst_71 [1, 2] : vector<1x12x128xf32> to vector<1xf32>
    %338 = vector.shape_cast %337 : vector<1xf32> to vector<1x1x1xf32>
    %339 = vector.extract %338[0, 0, 0] : f32 from vector<1x1x1xf32>
    %340 = vector.broadcast %339 : f32 to vector<1x1xf32>
    %cst_72 = arith.constant 0.00260416674 : f32
    %341 = vector.broadcast %cst_72 : f32 to vector<1x1xf32>
    %342 = arith.mulf %340, %341 : vector<1x1xf32>
    %c3_73 = arith.constant 3 : index
    %343 = memref.load %arg2[%c3_73] : memref<8xf32, #tpu.memory_space<smem>>
    %cst_74 = arith.constant 9.99999974E-6 : f32
    %344 = vector.broadcast %cst_74 : f32 to vector<1x1xf32>
    %345 = arith.addf %342, %344 : vector<1x1xf32>
    %346 = math.rsqrt %345 : vector<1x1xf32>
    %347 = vector.broadcast %343 : f32 to vector<1x1xf32>
    %348 = arith.mulf %347, %346 : vector<1x1xf32>
    %349 = vector.broadcast %348 : vector<1x1xf32> to vector<12x128xf32>
    %350 = arith.mulf %333, %349 : vector<12x128xf32>
    %c3_75 = arith.constant 3 : index
    %351 = memref.load %arg3[%c3_75] : memref<8xf32, #tpu.memory_space<smem>>
    %352 = vector.broadcast %351 : f32 to vector<12x128xf32>
    %353 = arith.addf %350, %352 : vector<12x128xf32>
    %cst_76 = arith.constant dense<0xFF800000> : vector<128xf32>
    %354 = vector.multi_reduction <maximumf>, %353, %cst_76 [0] : vector<12x128xf32> to vector<128xf32>
    %355 = vector.shape_cast %354 : vector<128xf32> to vector<1x128xf32>
    %c3_77 = arith.constant 3 : index
    %c0_78 = arith.constant 0 : index
    %356 = vector.load %arg4[%c3_77, %c0_78] : memref<8x128xf32, #tpu.memory_space<vmem>>, vector<1x128xf32>
    tpu.vector_store %arg4[%c3_77, %c0_78], %355 {strides = array<i32>} : memref<8x128xf32, #tpu.memory_space<vmem>>, vector<1x128xf32>,
    %cst_79 = arith.constant 0.000000e+00 : f32
    %357 = vector.broadcast %cst_79 : f32 to vector<12x128xf32>
    %c48 = arith.constant 48 : index
    %358 = memref.load %arg1[%c48] : memref<96xf32, #tpu.memory_space<smem>>
    %359 = vector.broadcast %358 : f32 to vector<12x128xf32>
    %360 = arith.mulf %359, %1 : vector<12x128xf32>
    %361 = arith.addf %357, %360 : vector<12x128xf32>
    %c51 = arith.constant 51 : index
    %362 = memref.load %arg1[%c51] : memref<96xf32, #tpu.memory_space<smem>>
    %363 = vector.broadcast %362 : f32 to vector<12x128xf32>
    %364 = arith.mulf %363, %3 : vector<12x128xf32>
    %365 = arith.addf %361, %364 : vector<12x128xf32>
    %c54 = arith.constant 54 : index
    %366 = memref.load %arg1[%c54] : memref<96xf32, #tpu.memory_space<smem>>
    %367 = vector.broadcast %366 : f32 to vector<12x128xf32>
    %368 = arith.mulf %367, %5 : vector<12x128xf32>
    %369 = arith.addf %365, %368 : vector<12x128xf32>
    %c57 = arith.constant 57 : index
    %370 = memref.load %arg1[%c57] : memref<96xf32, #tpu.memory_space<smem>>
    %371 = vector.broadcast %370 : f32 to vector<12x128xf32>
    %372 = arith.mulf %371, %7 : vector<12x128xf32>
    %373 = arith.addf %369, %372 : vector<12x128xf32>
    %c49 = arith.constant 49 : index
    %374 = memref.load %arg1[%c49] : memref<96xf32, #tpu.memory_space<smem>>
    %375 = vector.broadcast %374 : f32 to vector<12x128xf32>
    %376 = arith.mulf %375, %9 : vector<12x128xf32>
    %377 = arith.addf %373, %376 : vector<12x128xf32>
    %c52 = arith.constant 52 : index
    %378 = memref.load %arg1[%c52] : memref<96xf32, #tpu.memory_space<smem>>
    %379 = vector.broadcast %378 : f32 to vector<12x128xf32>
    %380 = arith.mulf %379, %11 : vector<12x128xf32>
    %381 = arith.addf %377, %380 : vector<12x128xf32>
    %c55 = arith.constant 55 : index
    %382 = memref.load %arg1[%c55] : memref<96xf32, #tpu.memory_space<smem>>
    %383 = vector.broadcast %382 : f32 to vector<12x128xf32>
    %384 = arith.mulf %383, %13 : vector<12x128xf32>
    %385 = arith.addf %381, %384 : vector<12x128xf32>
    %c58 = arith.constant 58 : index
    %386 = memref.load %arg1[%c58] : memref<96xf32, #tpu.memory_space<smem>>
    %387 = vector.broadcast %386 : f32 to vector<12x128xf32>
    %388 = arith.mulf %387, %15 : vector<12x128xf32>
    %389 = arith.addf %385, %388 : vector<12x128xf32>
    %c50 = arith.constant 50 : index
    %390 = memref.load %arg1[%c50] : memref<96xf32, #tpu.memory_space<smem>>
    %391 = vector.broadcast %390 : f32 to vector<12x128xf32>
    %392 = arith.mulf %391, %17 : vector<12x128xf32>
    %393 = arith.addf %389, %392 : vector<12x128xf32>
    %c53 = arith.constant 53 : index
    %394 = memref.load %arg1[%c53] : memref<96xf32, #tpu.memory_space<smem>>
    %395 = vector.broadcast %394 : f32 to vector<12x128xf32>
    %396 = arith.mulf %395, %19 : vector<12x128xf32>
    %397 = arith.addf %393, %396 : vector<12x128xf32>
    %c56 = arith.constant 56 : index
    %398 = memref.load %arg1[%c56] : memref<96xf32, #tpu.memory_space<smem>>
    %399 = vector.broadcast %398 : f32 to vector<12x128xf32>
    %400 = arith.mulf %399, %21 : vector<12x128xf32>
    %401 = arith.addf %397, %400 : vector<12x128xf32>
    %c59 = arith.constant 59 : index
    %402 = memref.load %arg1[%c59] : memref<96xf32, #tpu.memory_space<smem>>
    %403 = vector.broadcast %402 : f32 to vector<12x128xf32>
    %404 = arith.mulf %403, %23 : vector<12x128xf32>
    %405 = arith.addf %401, %404 : vector<12x128xf32>
    %406 = arith.mulf %405, %28 : vector<12x128xf32>
    %407 = vector.shape_cast %406 : vector<12x128xf32> to vector<1x12x128xf32>
    %cst_80 = arith.constant dense<0.000000e+00> : vector<1xf32>
    %408 = vector.multi_reduction <add>, %407, %cst_80 [1, 2] : vector<1x12x128xf32> to vector<1xf32>
    %409 = vector.shape_cast %408 : vector<1xf32> to vector<1x1x1xf32>
    %410 = vector.extract %409[0, 0, 0] : f32 from vector<1x1x1xf32>
    %411 = vector.broadcast %410 : f32 to vector<1x1xf32>
    %cst_81 = arith.constant 0.00260416674 : f32
    %412 = vector.broadcast %cst_81 : f32 to vector<1x1xf32>
    %413 = arith.mulf %411, %412 : vector<1x1xf32>
    %414 = vector.broadcast %413 : vector<1x1xf32> to vector<12x128xf32>
    %415 = arith.subf %405, %414 : vector<12x128xf32>
    %416 = arith.mulf %415, %415 : vector<12x128xf32>
    %417 = arith.mulf %416, %28 : vector<12x128xf32>
    %418 = vector.shape_cast %417 : vector<12x128xf32> to vector<1x12x128xf32>
    %cst_82 = arith.constant dense<0.000000e+00> : vector<1xf32>
    %419 = vector.multi_reduction <add>, %418, %cst_82 [1, 2] : vector<1x12x128xf32> to vector<1xf32>
    %420 = vector.shape_cast %419 : vector<1xf32> to vector<1x1x1xf32>
    %421 = vector.extract %420[0, 0, 0] : f32 from vector<1x1x1xf32>
    %422 = vector.broadcast %421 : f32 to vector<1x1xf32>
    %cst_83 = arith.constant 0.00260416674 : f32
    %423 = vector.broadcast %cst_83 : f32 to vector<1x1xf32>
    %424 = arith.mulf %422, %423 : vector<1x1xf32>
    %c4_84 = arith.constant 4 : index
    %425 = memref.load %arg2[%c4_84] : memref<8xf32, #tpu.memory_space<smem>>
    %cst_85 = arith.constant 9.99999974E-6 : f32
    %426 = vector.broadcast %cst_85 : f32 to vector<1x1xf32>
    %427 = arith.addf %424, %426 : vector<1x1xf32>
    %428 = math.rsqrt %427 : vector<1x1xf32>
    %429 = vector.broadcast %425 : f32 to vector<1x1xf32>
    %430 = arith.mulf %429, %428 : vector<1x1xf32>
    %431 = vector.broadcast %430 : vector<1x1xf32> to vector<12x128xf32>
    %432 = arith.mulf %415, %431 : vector<12x128xf32>
    %c4_86 = arith.constant 4 : index
    %433 = memref.load %arg3[%c4_86] : memref<8xf32, #tpu.memory_space<smem>>
    %434 = vector.broadcast %433 : f32 to vector<12x128xf32>
    %435 = arith.addf %432, %434 : vector<12x128xf32>
    %cst_87 = arith.constant dense<0xFF800000> : vector<128xf32>
    %436 = vector.multi_reduction <maximumf>, %435, %cst_87 [0] : vector<12x128xf32> to vector<128xf32>
    %437 = vector.shape_cast %436 : vector<128xf32> to vector<1x128xf32>
    %c4_88 = arith.constant 4 : index
    %c0_89 = arith.constant 0 : index
    %438 = vector.load %arg4[%c4_88, %c0_89] : memref<8x128xf32, #tpu.memory_space<vmem>>, vector<1x128xf32>
    tpu.vector_store %arg4[%c4_88, %c0_89], %437 {strides = array<i32>} : memref<8x128xf32, #tpu.memory_space<vmem>>, vector<1x128xf32>,
    %cst_90 = arith.constant 0.000000e+00 : f32
    %439 = vector.broadcast %cst_90 : f32 to vector<12x128xf32>
    %c60 = arith.constant 60 : index
    %440 = memref.load %arg1[%c60] : memref<96xf32, #tpu.memory_space<smem>>
    %441 = vector.broadcast %440 : f32 to vector<12x128xf32>
    %442 = arith.mulf %441, %1 : vector<12x128xf32>
    %443 = arith.addf %439, %442 : vector<12x128xf32>
    %c63 = arith.constant 63 : index
    %444 = memref.load %arg1[%c63] : memref<96xf32, #tpu.memory_space<smem>>
    %445 = vector.broadcast %444 : f32 to vector<12x128xf32>
    %446 = arith.mulf %445, %3 : vector<12x128xf32>
    %447 = arith.addf %443, %446 : vector<12x128xf32>
    %c66 = arith.constant 66 : index
    %448 = memref.load %arg1[%c66] : memref<96xf32, #tpu.memory_space<smem>>
    %449 = vector.broadcast %448 : f32 to vector<12x128xf32>
    %450 = arith.mulf %449, %5 : vector<12x128xf32>
    %451 = arith.addf %447, %450 : vector<12x128xf32>
    %c69 = arith.constant 69 : index
    %452 = memref.load %arg1[%c69] : memref<96xf32, #tpu.memory_space<smem>>
    %453 = vector.broadcast %452 : f32 to vector<12x128xf32>
    %454 = arith.mulf %453, %7 : vector<12x128xf32>
    %455 = arith.addf %451, %454 : vector<12x128xf32>
    %c61 = arith.constant 61 : index
    %456 = memref.load %arg1[%c61] : memref<96xf32, #tpu.memory_space<smem>>
    %457 = vector.broadcast %456 : f32 to vector<12x128xf32>
    %458 = arith.mulf %457, %9 : vector<12x128xf32>
    %459 = arith.addf %455, %458 : vector<12x128xf32>
    %c64 = arith.constant 64 : index
    %460 = memref.load %arg1[%c64] : memref<96xf32, #tpu.memory_space<smem>>
    %461 = vector.broadcast %460 : f32 to vector<12x128xf32>
    %462 = arith.mulf %461, %11 : vector<12x128xf32>
    %463 = arith.addf %459, %462 : vector<12x128xf32>
    %c67 = arith.constant 67 : index
    %464 = memref.load %arg1[%c67] : memref<96xf32, #tpu.memory_space<smem>>
    %465 = vector.broadcast %464 : f32 to vector<12x128xf32>
    %466 = arith.mulf %465, %13 : vector<12x128xf32>
    %467 = arith.addf %463, %466 : vector<12x128xf32>
    %c70 = arith.constant 70 : index
    %468 = memref.load %arg1[%c70] : memref<96xf32, #tpu.memory_space<smem>>
    %469 = vector.broadcast %468 : f32 to vector<12x128xf32>
    %470 = arith.mulf %469, %15 : vector<12x128xf32>
    %471 = arith.addf %467, %470 : vector<12x128xf32>
    %c62 = arith.constant 62 : index
    %472 = memref.load %arg1[%c62] : memref<96xf32, #tpu.memory_space<smem>>
    %473 = vector.broadcast %472 : f32 to vector<12x128xf32>
    %474 = arith.mulf %473, %17 : vector<12x128xf32>
    %475 = arith.addf %471, %474 : vector<12x128xf32>
    %c65 = arith.constant 65 : index
    %476 = memref.load %arg1[%c65] : memref<96xf32, #tpu.memory_space<smem>>
    %477 = vector.broadcast %476 : f32 to vector<12x128xf32>
    %478 = arith.mulf %477, %19 : vector<12x128xf32>
    %479 = arith.addf %475, %478 : vector<12x128xf32>
    %c68 = arith.constant 68 : index
    %480 = memref.load %arg1[%c68] : memref<96xf32, #tpu.memory_space<smem>>
    %481 = vector.broadcast %480 : f32 to vector<12x128xf32>
    %482 = arith.mulf %481, %21 : vector<12x128xf32>
    %483 = arith.addf %479, %482 : vector<12x128xf32>
    %c71 = arith.constant 71 : index
    %484 = memref.load %arg1[%c71] : memref<96xf32, #tpu.memory_space<smem>>
    %485 = vector.broadcast %484 : f32 to vector<12x128xf32>
    %486 = arith.mulf %485, %23 : vector<12x128xf32>
    %487 = arith.addf %483, %486 : vector<12x128xf32>
    %488 = arith.mulf %487, %28 : vector<12x128xf32>
    %489 = vector.shape_cast %488 : vector<12x128xf32> to vector<1x12x128xf32>
    %cst_91 = arith.constant dense<0.000000e+00> : vector<1xf32>
    %490 = vector.multi_reduction <add>, %489, %cst_91 [1, 2] : vector<1x12x128xf32> to vector<1xf32>
    %491 = vector.shape_cast %490 : vector<1xf32> to vector<1x1x1xf32>
    %492 = vector.extract %491[0, 0, 0] : f32 from vector<1x1x1xf32>
    %493 = vector.broadcast %492 : f32 to vector<1x1xf32>
    %cst_92 = arith.constant 0.00260416674 : f32
    %494 = vector.broadcast %cst_92 : f32 to vector<1x1xf32>
    %495 = arith.mulf %493, %494 : vector<1x1xf32>
    %496 = vector.broadcast %495 : vector<1x1xf32> to vector<12x128xf32>
    %497 = arith.subf %487, %496 : vector<12x128xf32>
    %498 = arith.mulf %497, %497 : vector<12x128xf32>
    %499 = arith.mulf %498, %28 : vector<12x128xf32>
    %500 = vector.shape_cast %499 : vector<12x128xf32> to vector<1x12x128xf32>
    %cst_93 = arith.constant dense<0.000000e+00> : vector<1xf32>
    %501 = vector.multi_reduction <add>, %500, %cst_93 [1, 2] : vector<1x12x128xf32> to vector<1xf32>
    %502 = vector.shape_cast %501 : vector<1xf32> to vector<1x1x1xf32>
    %503 = vector.extract %502[0, 0, 0] : f32 from vector<1x1x1xf32>
    %504 = vector.broadcast %503 : f32 to vector<1x1xf32>
    %cst_94 = arith.constant 0.00260416674 : f32
    %505 = vector.broadcast %cst_94 : f32 to vector<1x1xf32>
    %506 = arith.mulf %504, %505 : vector<1x1xf32>
    %c5_95 = arith.constant 5 : index
    %507 = memref.load %arg2[%c5_95] : memref<8xf32, #tpu.memory_space<smem>>
    %cst_96 = arith.constant 9.99999974E-6 : f32
    %508 = vector.broadcast %cst_96 : f32 to vector<1x1xf32>
    %509 = arith.addf %506, %508 : vector<1x1xf32>
    %510 = math.rsqrt %509 : vector<1x1xf32>
    %511 = vector.broadcast %507 : f32 to vector<1x1xf32>
    %512 = arith.mulf %511, %510 : vector<1x1xf32>
    %513 = vector.broadcast %512 : vector<1x1xf32> to vector<12x128xf32>
    %514 = arith.mulf %497, %513 : vector<12x128xf32>
    %c5_97 = arith.constant 5 : index
    %515 = memref.load %arg3[%c5_97] : memref<8xf32, #tpu.memory_space<smem>>
    %516 = vector.broadcast %515 : f32 to vector<12x128xf32>
    %517 = arith.addf %514, %516 : vector<12x128xf32>
    %cst_98 = arith.constant dense<0xFF800000> : vector<128xf32>
    %518 = vector.multi_reduction <maximumf>, %517, %cst_98 [0] : vector<12x128xf32> to vector<128xf32>
    %519 = vector.shape_cast %518 : vector<128xf32> to vector<1x128xf32>
    %c5_99 = arith.constant 5 : index
    %c0_100 = arith.constant 0 : index
    %520 = vector.load %arg4[%c5_99, %c0_100] : memref<8x128xf32, #tpu.memory_space<vmem>>, vector<1x128xf32>
    tpu.vector_store %arg4[%c5_99, %c0_100], %519 {strides = array<i32>} : memref<8x128xf32, #tpu.memory_space<vmem>>, vector<1x128xf32>,
    %cst_101 = arith.constant 0.000000e+00 : f32
    %521 = vector.broadcast %cst_101 : f32 to vector<12x128xf32>
    %c72 = arith.constant 72 : index
    %522 = memref.load %arg1[%c72] : memref<96xf32, #tpu.memory_space<smem>>
    %523 = vector.broadcast %522 : f32 to vector<12x128xf32>
    %524 = arith.mulf %523, %1 : vector<12x128xf32>
    %525 = arith.addf %521, %524 : vector<12x128xf32>
    %c75 = arith.constant 75 : index
    %526 = memref.load %arg1[%c75] : memref<96xf32, #tpu.memory_space<smem>>
    %527 = vector.broadcast %526 : f32 to vector<12x128xf32>
    %528 = arith.mulf %527, %3 : vector<12x128xf32>
    %529 = arith.addf %525, %528 : vector<12x128xf32>
    %c78 = arith.constant 78 : index
    %530 = memref.load %arg1[%c78] : memref<96xf32, #tpu.memory_space<smem>>
    %531 = vector.broadcast %530 : f32 to vector<12x128xf32>
    %532 = arith.mulf %531, %5 : vector<12x128xf32>
    %533 = arith.addf %529, %532 : vector<12x128xf32>
    %c81 = arith.constant 81 : index
    %534 = memref.load %arg1[%c81] : memref<96xf32, #tpu.memory_space<smem>>
    %535 = vector.broadcast %534 : f32 to vector<12x128xf32>
    %536 = arith.mulf %535, %7 : vector<12x128xf32>
    %537 = arith.addf %533, %536 : vector<12x128xf32>
    %c73 = arith.constant 73 : index
    %538 = memref.load %arg1[%c73] : memref<96xf32, #tpu.memory_space<smem>>
    %539 = vector.broadcast %538 : f32 to vector<12x128xf32>
    %540 = arith.mulf %539, %9 : vector<12x128xf32>
    %541 = arith.addf %537, %540 : vector<12x128xf32>
    %c76 = arith.constant 76 : index
    %542 = memref.load %arg1[%c76] : memref<96xf32, #tpu.memory_space<smem>>
    %543 = vector.broadcast %542 : f32 to vector<12x128xf32>
    %544 = arith.mulf %543, %11 : vector<12x128xf32>
    %545 = arith.addf %541, %544 : vector<12x128xf32>
    %c79 = arith.constant 79 : index
    %546 = memref.load %arg1[%c79] : memref<96xf32, #tpu.memory_space<smem>>
    %547 = vector.broadcast %546 : f32 to vector<12x128xf32>
    %548 = arith.mulf %547, %13 : vector<12x128xf32>
    %549 = arith.addf %545, %548 : vector<12x128xf32>
    %c82 = arith.constant 82 : index
    %550 = memref.load %arg1[%c82] : memref<96xf32, #tpu.memory_space<smem>>
    %551 = vector.broadcast %550 : f32 to vector<12x128xf32>
    %552 = arith.mulf %551, %15 : vector<12x128xf32>
    %553 = arith.addf %549, %552 : vector<12x128xf32>
    %c74 = arith.constant 74 : index
    %554 = memref.load %arg1[%c74] : memref<96xf32, #tpu.memory_space<smem>>
    %555 = vector.broadcast %554 : f32 to vector<12x128xf32>
    %556 = arith.mulf %555, %17 : vector<12x128xf32>
    %557 = arith.addf %553, %556 : vector<12x128xf32>
    %c77 = arith.constant 77 : index
    %558 = memref.load %arg1[%c77] : memref<96xf32, #tpu.memory_space<smem>>
    %559 = vector.broadcast %558 : f32 to vector<12x128xf32>
    %560 = arith.mulf %559, %19 : vector<12x128xf32>
    %561 = arith.addf %557, %560 : vector<12x128xf32>
    %c80 = arith.constant 80 : index
    %562 = memref.load %arg1[%c80] : memref<96xf32, #tpu.memory_space<smem>>
    %563 = vector.broadcast %562 : f32 to vector<12x128xf32>
    %564 = arith.mulf %563, %21 : vector<12x128xf32>
    %565 = arith.addf %561, %564 : vector<12x128xf32>
    %c83 = arith.constant 83 : index
    %566 = memref.load %arg1[%c83] : memref<96xf32, #tpu.memory_space<smem>>
    %567 = vector.broadcast %566 : f32 to vector<12x128xf32>
    %568 = arith.mulf %567, %23 : vector<12x128xf32>
    %569 = arith.addf %565, %568 : vector<12x128xf32>
    %570 = arith.mulf %569, %28 : vector<12x128xf32>
    %571 = vector.shape_cast %570 : vector<12x128xf32> to vector<1x12x128xf32>
    %cst_102 = arith.constant dense<0.000000e+00> : vector<1xf32>
    %572 = vector.multi_reduction <add>, %571, %cst_102 [1, 2] : vector<1x12x128xf32> to vector<1xf32>
    %573 = vector.shape_cast %572 : vector<1xf32> to vector<1x1x1xf32>
    %574 = vector.extract %573[0, 0, 0] : f32 from vector<1x1x1xf32>
    %575 = vector.broadcast %574 : f32 to vector<1x1xf32>
    %cst_103 = arith.constant 0.00260416674 : f32
    %576 = vector.broadcast %cst_103 : f32 to vector<1x1xf32>
    %577 = arith.mulf %575, %576 : vector<1x1xf32>
    %578 = vector.broadcast %577 : vector<1x1xf32> to vector<12x128xf32>
    %579 = arith.subf %569, %578 : vector<12x128xf32>
    %580 = arith.mulf %579, %579 : vector<12x128xf32>
    %581 = arith.mulf %580, %28 : vector<12x128xf32>
    %582 = vector.shape_cast %581 : vector<12x128xf32> to vector<1x12x128xf32>
    %cst_104 = arith.constant dense<0.000000e+00> : vector<1xf32>
    %583 = vector.multi_reduction <add>, %582, %cst_104 [1, 2] : vector<1x12x128xf32> to vector<1xf32>
    %584 = vector.shape_cast %583 : vector<1xf32> to vector<1x1x1xf32>
    %585 = vector.extract %584[0, 0, 0] : f32 from vector<1x1x1xf32>
    %586 = vector.broadcast %585 : f32 to vector<1x1xf32>
    %cst_105 = arith.constant 0.00260416674 : f32
    %587 = vector.broadcast %cst_105 : f32 to vector<1x1xf32>
    %588 = arith.mulf %586, %587 : vector<1x1xf32>
    %c6_106 = arith.constant 6 : index
    %589 = memref.load %arg2[%c6_106] : memref<8xf32, #tpu.memory_space<smem>>
    %cst_107 = arith.constant 9.99999974E-6 : f32
    %590 = vector.broadcast %cst_107 : f32 to vector<1x1xf32>
    %591 = arith.addf %588, %590 : vector<1x1xf32>
    %592 = math.rsqrt %591 : vector<1x1xf32>
    %593 = vector.broadcast %589 : f32 to vector<1x1xf32>
    %594 = arith.mulf %593, %592 : vector<1x1xf32>
    %595 = vector.broadcast %594 : vector<1x1xf32> to vector<12x128xf32>
    %596 = arith.mulf %579, %595 : vector<12x128xf32>
    %c6_108 = arith.constant 6 : index
    %597 = memref.load %arg3[%c6_108] : memref<8xf32, #tpu.memory_space<smem>>
    %598 = vector.broadcast %597 : f32 to vector<12x128xf32>
    %599 = arith.addf %596, %598 : vector<12x128xf32>
    %cst_109 = arith.constant dense<0xFF800000> : vector<128xf32>
    %600 = vector.multi_reduction <maximumf>, %599, %cst_109 [0] : vector<12x128xf32> to vector<128xf32>
    %601 = vector.shape_cast %600 : vector<128xf32> to vector<1x128xf32>
    %c6_110 = arith.constant 6 : index
    %c0_111 = arith.constant 0 : index
    %602 = vector.load %arg4[%c6_110, %c0_111] : memref<8x128xf32, #tpu.memory_space<vmem>>, vector<1x128xf32>
    tpu.vector_store %arg4[%c6_110, %c0_111], %601 {strides = array<i32>} : memref<8x128xf32, #tpu.memory_space<vmem>>, vector<1x128xf32>,
    %cst_112 = arith.constant 0.000000e+00 : f32
    %603 = vector.broadcast %cst_112 : f32 to vector<12x128xf32>
    %c84 = arith.constant 84 : index
    %604 = memref.load %arg1[%c84] : memref<96xf32, #tpu.memory_space<smem>>
    %605 = vector.broadcast %604 : f32 to vector<12x128xf32>
    %606 = arith.mulf %605, %1 : vector<12x128xf32>
    %607 = arith.addf %603, %606 : vector<12x128xf32>
    %c87 = arith.constant 87 : index
    %608 = memref.load %arg1[%c87] : memref<96xf32, #tpu.memory_space<smem>>
    %609 = vector.broadcast %608 : f32 to vector<12x128xf32>
    %610 = arith.mulf %609, %3 : vector<12x128xf32>
    %611 = arith.addf %607, %610 : vector<12x128xf32>
    %c90 = arith.constant 90 : index
    %612 = memref.load %arg1[%c90] : memref<96xf32, #tpu.memory_space<smem>>
    %613 = vector.broadcast %612 : f32 to vector<12x128xf32>
    %614 = arith.mulf %613, %5 : vector<12x128xf32>
    %615 = arith.addf %611, %614 : vector<12x128xf32>
    %c93 = arith.constant 93 : index
    %616 = memref.load %arg1[%c93] : memref<96xf32, #tpu.memory_space<smem>>
    %617 = vector.broadcast %616 : f32 to vector<12x128xf32>
    %618 = arith.mulf %617, %7 : vector<12x128xf32>
    %619 = arith.addf %615, %618 : vector<12x128xf32>
    %c85 = arith.constant 85 : index
    %620 = memref.load %arg1[%c85] : memref<96xf32, #tpu.memory_space<smem>>
    %621 = vector.broadcast %620 : f32 to vector<12x128xf32>
    %622 = arith.mulf %621, %9 : vector<12x128xf32>
    %623 = arith.addf %619, %622 : vector<12x128xf32>
    %c88 = arith.constant 88 : index
    %624 = memref.load %arg1[%c88] : memref<96xf32, #tpu.memory_space<smem>>
    %625 = vector.broadcast %624 : f32 to vector<12x128xf32>
    %626 = arith.mulf %625, %11 : vector<12x128xf32>
    %627 = arith.addf %623, %626 : vector<12x128xf32>
    %c91 = arith.constant 91 : index
    %628 = memref.load %arg1[%c91] : memref<96xf32, #tpu.memory_space<smem>>
    %629 = vector.broadcast %628 : f32 to vector<12x128xf32>
    %630 = arith.mulf %629, %13 : vector<12x128xf32>
    %631 = arith.addf %627, %630 : vector<12x128xf32>
    %c94 = arith.constant 94 : index
    %632 = memref.load %arg1[%c94] : memref<96xf32, #tpu.memory_space<smem>>
    %633 = vector.broadcast %632 : f32 to vector<12x128xf32>
    %634 = arith.mulf %633, %15 : vector<12x128xf32>
    %635 = arith.addf %631, %634 : vector<12x128xf32>
    %c86 = arith.constant 86 : index
    %636 = memref.load %arg1[%c86] : memref<96xf32, #tpu.memory_space<smem>>
    %637 = vector.broadcast %636 : f32 to vector<12x128xf32>
    %638 = arith.mulf %637, %17 : vector<12x128xf32>
    %639 = arith.addf %635, %638 : vector<12x128xf32>
    %c89 = arith.constant 89 : index
    %640 = memref.load %arg1[%c89] : memref<96xf32, #tpu.memory_space<smem>>
    %641 = vector.broadcast %640 : f32 to vector<12x128xf32>
    %642 = arith.mulf %641, %19 : vector<12x128xf32>
    %643 = arith.addf %639, %642 : vector<12x128xf32>
    %c92 = arith.constant 92 : index
    %644 = memref.load %arg1[%c92] : memref<96xf32, #tpu.memory_space<smem>>
    %645 = vector.broadcast %644 : f32 to vector<12x128xf32>
    %646 = arith.mulf %645, %21 : vector<12x128xf32>
    %647 = arith.addf %643, %646 : vector<12x128xf32>
    %c95 = arith.constant 95 : index
    %648 = memref.load %arg1[%c95] : memref<96xf32, #tpu.memory_space<smem>>
    %649 = vector.broadcast %648 : f32 to vector<12x128xf32>
    %650 = arith.mulf %649, %23 : vector<12x128xf32>
    %651 = arith.addf %647, %650 : vector<12x128xf32>
    %652 = arith.mulf %651, %28 : vector<12x128xf32>
    %653 = vector.shape_cast %652 : vector<12x128xf32> to vector<1x12x128xf32>
    %cst_113 = arith.constant dense<0.000000e+00> : vector<1xf32>
    %654 = vector.multi_reduction <add>, %653, %cst_113 [1, 2] : vector<1x12x128xf32> to vector<1xf32>
    %655 = vector.shape_cast %654 : vector<1xf32> to vector<1x1x1xf32>
    %656 = vector.extract %655[0, 0, 0] : f32 from vector<1x1x1xf32>
    %657 = vector.broadcast %656 : f32 to vector<1x1xf32>
    %cst_114 = arith.constant 0.00260416674 : f32
    %658 = vector.broadcast %cst_114 : f32 to vector<1x1xf32>
    %659 = arith.mulf %657, %658 : vector<1x1xf32>
    %660 = vector.broadcast %659 : vector<1x1xf32> to vector<12x128xf32>
    %661 = arith.subf %651, %660 : vector<12x128xf32>
    %662 = arith.mulf %661, %661 : vector<12x128xf32>
    %663 = arith.mulf %662, %28 : vector<12x128xf32>
    %664 = vector.shape_cast %663 : vector<12x128xf32> to vector<1x12x128xf32>
    %cst_115 = arith.constant dense<0.000000e+00> : vector<1xf32>
    %665 = vector.multi_reduction <add>, %664, %cst_115 [1, 2] : vector<1x12x128xf32> to vector<1xf32>
    %666 = vector.shape_cast %665 : vector<1xf32> to vector<1x1x1xf32>
    %667 = vector.extract %666[0, 0, 0] : f32 from vector<1x1x1xf32>
    %668 = vector.broadcast %667 : f32 to vector<1x1xf32>
    %cst_116 = arith.constant 0.00260416674 : f32
    %669 = vector.broadcast %cst_116 : f32 to vector<1x1xf32>
    %670 = arith.mulf %668, %669 : vector<1x1xf32>
    %c7_117 = arith.constant 7 : index
    %671 = memref.load %arg2[%c7_117] : memref<8xf32, #tpu.memory_space<smem>>
    %cst_118 = arith.constant 9.99999974E-6 : f32
    %672 = vector.broadcast %cst_118 : f32 to vector<1x1xf32>
    %673 = arith.addf %670, %672 : vector<1x1xf32>
    %674 = math.rsqrt %673 : vector<1x1xf32>
    %675 = vector.broadcast %671 : f32 to vector<1x1xf32>
    %676 = arith.mulf %675, %674 : vector<1x1xf32>
    %677 = vector.broadcast %676 : vector<1x1xf32> to vector<12x128xf32>
    %678 = arith.mulf %661, %677 : vector<12x128xf32>
    %c7_119 = arith.constant 7 : index
    %679 = memref.load %arg3[%c7_119] : memref<8xf32, #tpu.memory_space<smem>>
    %680 = vector.broadcast %679 : f32 to vector<12x128xf32>
    %681 = arith.addf %678, %680 : vector<12x128xf32>
    %cst_120 = arith.constant dense<0xFF800000> : vector<128xf32>
    %682 = vector.multi_reduction <maximumf>, %681, %cst_120 [0] : vector<12x128xf32> to vector<128xf32>
    %683 = vector.shape_cast %682 : vector<128xf32> to vector<1x128xf32>
    %c7_121 = arith.constant 7 : index
    %c0_122 = arith.constant 0 : index
    %684 = vector.load %arg4[%c7_121, %c0_122] : memref<8x128xf32, #tpu.memory_space<vmem>>, vector<1x128xf32>
    tpu.vector_store %arg4[%c7_121, %c0_122], %683 {strides = array<i32>} : memref<8x128xf32, #tpu.memory_space<vmem>>, vector<1x128xf32>,
    return
  }
}

</mosaic_0001>

<bundles_post_ra>
// kernel: tpu_custom_call.1
= control target key start
LH: loop header
LB: loop body
LE: loop exit
PB: predicated region body
PF: predicated region fallthrough
CT: control target
= control target key end

     0   :  { %9 = vsyncpa [#allocation3], 0  ;;  %s1977_s0 = inlined_call_operand.hbm [shape: f32[4,16,128], index: 0, kind: input, shape index: {}]   ;;  %s1978_s1 = inlined_call_operand.vmem [shape: f32[96], index: 1, kind: input, shape index: {}]   ;;  %s1979_s2 = inlined_call_operand.vmem [shape: f32[8], index: 2, kind: input, shape index: {}]   ;;  %s1980_s3 = inlined_call_operand.vmem [shape: f32[8], index: 3, kind: input, shape index: {}]   ;;  %s1981_s4 = inlined_call_operand.hbm [shape: f32[8,128], index: 4, kind: output, shape index: {}]  }
   0x1   :  { %10 = vsyncpa [#allocation5], 0 }
   0x2   :  { %11 = vsyncpa [#allocation8], 0  ;;  %s41_s17 = sshll.u32 %s1979_s2, 4  ;;  %s42_s17 = int_to_ptr.vmem [resolvable:$true] %s41_s17 }
   0x3   :  { %12 = vsyncpa [#allocation4], 0  ;;  %s1316_s18 = scalar_lea.vmem %s42_s17, 16  ;;  %p1321_p1 = scmp.lt.s32.totalorder %s42_s17, %s42_s17 }
   0x4   :  { %p1317_p0 = scmp.ne.s32.totalorder %s42_s17, %s1316_s18  ;;  %p1322_p2 = scmp.lt.s32.totalorder %s1316_s18, %s1316_s18 }
   0x6   :  { %p1323_p3 = por %p1322_p2, %p1321_p1 }
   0x8   :  { %p1324_p4 = pnand %p1323_p3, %p1317_p0 }
   0xa   :  { %1327 = shalt.err (!%p1324_p4)
}
   0xb   :  { %s1404_s19 = smov [#allocation7]   ;;  %s1405_s20 = smov [#allocation2]  }
   0xc   :  { %44 = dma.vmem_to_smem %s42_s17, 16, %s1404_s19, [#allocation8]  }
   0xd   :  { %s18_s21 = sshll.u32 %s1405_s20, 4  ;;  %s1328_s24 = scalar_lea.hbm %s1977_s0, 1024  ;;  %s19_s21 = int_to_ptr.vmem [resolvable:$true] %s18_s21 }
   0xe   :  { %p1329_p5 = scmp.ne.s32.totalorder %s1977_s0, %s1328_s24  ;;  %p1332_p6 = scmp.lt.u32.totalorder %s1328_s24, %s1977_s0 }
  0x10   :  { %p1334_p7 = pnand %p1332_p6, %p1329_p5 }
  0x12   :  { %1337 = shalt.err (!%p1334_p7)
}
  0x13   :  { %s1338_s28 = scalar_lea.vmem %s19_s21, 1024  ;;  %p1343_p9 = scmp.lt.s32.totalorder %s19_s21, %s19_s21 }
  0x14   :  { %p1339_p8 = scmp.ne.s32.totalorder %s19_s21, %s1338_s28  ;;  %p1344_p10 = scmp.lt.s32.totalorder %s1338_s28, %s1338_s28 }
  0x16   :  { %p1345_p11 = por %p1344_p10, %p1343_p9 }
  0x18   :  { %p1346_p12 = pnand %p1345_p11, %p1339_p8 }
  0x1a   :  { %1349 = shalt.err (!%p1346_p12)
}
  0x1b   :  { %s1406_s29 = smov 128   ;;  %s1407_s30 = smov 8  }
  0x1c   :  { %24 = dma.hbm_to_vmem [thread:$0]  %s1977_s0, 1024, %s19_s21, [#allocation3], %s1406_s29, %s1406_s29, %s1407_s30  }
  0x1d   :  { %s31_s9 = sshll.u32 %s1978_s1, 4  ;;  %s51_s12 = sshll.u32 %s1980_s3, 4  ;;  %s32_s9 = int_to_ptr.vmem [resolvable:$true] %s31_s9  ;;  %s52_s12 = int_to_ptr.vmem [resolvable:$true] %s51_s12 }
  0x1e   :  { %s1350_s13 = scalar_lea.vmem %s32_s9, 16  ;;  %p1355_p0 = scmp.lt.s32.totalorder %s32_s9, %s32_s9 }
  0x1f   :  { %p1351_p13 = scmp.ne.s32.totalorder %s32_s9, %s1350_s13  ;;  %p1356_p1 = scmp.lt.s32.totalorder %s1350_s13, %s1350_s13 }
  0x21   :  { %p1357_p2 = por %p1356_p1, %p1355_p0 }
  0x23   :  { %p1358_p3 = pnand %p1357_p2, %p1351_p13 }
  0x25   :  { %1361 = shalt.err (!%p1358_p3)
}
  0x26   :  { %s1408_s14 = smov [#allocation6]   ;;  %s1362_s0 = scalar_lea.vmem %s52_s12, 16 }
  0x27   :  { %34 = dma.vmem_to_smem %s32_s9, 16, %s1408_s14, [#allocation5]  }
  0x28   :  { %p1363_p4 = scmp.ne.s32.totalorder %s52_s12, %s1362_s0  ;;  %p1367_p5 = scmp.lt.s32.totalorder %s52_s12, %s52_s12 }
  0x29   :  { %p1368_p6 = scmp.lt.s32.totalorder %s1362_s0, %s1362_s0 }
  0x2b   :  { %p1369_p7 = por %p1368_p6, %p1367_p5 }
  0x2d   :  { %p1370_p8 = pnand %p1369_p7, %p1363_p4 }
  0x2f   :  { %1373 = shalt.err (!%p1370_p8)
}
  0x30   :  { %s1409_s1 = smov [#allocation9]  }
  0x31   :  { %54 = dma.vmem_to_smem %s52_s12, 16, %s1409_s1, [#allocation8]  }
  0x32   :  { %1396 = dma.done.wait [#allocation3], 1024  }
  0x33   :  { %1397 = vsyncadd [#allocation3], 4294966272 }
  0x34   :  { %1398 = dma.done.wait [#allocation5], 16  }
  0x35   :  { %1399 = vsyncadd [#allocation5], 4294967280 }
  0x36   :  { %1400 = dma.done.wait [#allocation8], 32  }
  0x37   :  { %1401 = vsyncadd [#allocation8], 4294967264 }
  0x38   :  { %67 = sfence }
  0x39   :  { %s100_s3 = sld [smem:[#allocation6]]  ;;  %s1127_s15 = sld [smem:[#allocation6 + $0x3]]  ;;  %v1460_v0 = vld [vmem:[#allocation2] sm:$0xff]  ;;  %v1462_v1 = vld [vmem:[#allocation2 + $0x8] sm:$0xf]  ;;  %v1468_v3 = vld [vmem:[#allocation2 + $0x10] sm:$0xff]  ;;  %v95_v48 = vlaneseq }
  0x3a   :  { %s1128_s16 = sld [smem:[#allocation6 + $0x6]]  ;;  %s1129_s17 = sld [smem:[#allocation6 + $0x9]]  ;;  %v1466_v2 = vld [vmem:[#allocation2 + $0x18] sm:$0xf]  ;;  %v1470_v4 = vld [vmem:[#allocation2 + $0x20] sm:$0xff]  ;;  %v1478_v9 = vld [vmem:[#allocation2 + $0x30] sm:$0xff] }
  0x3b   :  { %s1458_s18 = sld [smem:[#allocation6 + $0x1]]  ;;  %s1464_s19 = sld [smem:[#allocation6 + $0x4]]  ;;  %v1472_v5 = vld [vmem:[#allocation2 + $0x28] sm:$0xf]  ;;  %v1480_v10 = vld [vmem:[#allocation2 + $0x38] sm:$0xf] }
  0x3c   :  { %s1474_s20 = sld [smem:[#allocation6 + $0x7]]  ;;  %s1482_s21 = sld [smem:[#allocation6 + $0xa]]  ;;  %v1488_v17 = vld [vmem:[#allocation2 + $0x2] sm:$0xff]  ;;  %v1490_v18 = vld [vmem:[#allocation2 + $0xa] sm:$0xf]  ;;  %v1497_v25 = vld [vmem:[#allocation2 + $0x12] sm:$0xff] }
  0x3d   :  { %s1493_s22 = sld [smem:[#allocation6 + $0x2]]  ;;  %v1499_v26 = vld [vmem:[#allocation2 + $0x1a] sm:$0xf]  ;;  %s1502_s23 = sld [smem:[#allocation6 + $0x5]]  ;;  %v1506_v32 = vld [vmem:[#allocation2 + $0x22] sm:$0xff]  ;;  %v1515_v39 = vld [vmem:[#allocation2 + $0x32] sm:$0xff] }
  0x3e   :  { %v1508_v33 = vld [vmem:[#allocation2 + $0x2a] sm:$0xf]  ;;  %s1511_s24 = sld [smem:[#allocation6 + $0x8]]  ;;  %v1517_v40 = vld [vmem:[#allocation2 + $0x3a] sm:$0xf]  ;;  %s1520_s25 = sld [smem:[#allocation6 + $0xb]] }
  0x3f   :  { %v101_v6 = vstv %s100_s3  ;;  %v107_v11 = vstv %s1127_s15  ;;  %v1524_v46 = vld [vmem:[#allocation2 + $0x4] sm:$0xff]  ;;  %v1526_v47 = vld [vmem:[#allocation2 + $0xc] sm:$0xf]  ;;  %v1531_v54 = vld [vmem:[#allocation2 + $0x14] sm:$0xff]  ;;  %v96_v63 = vand.u32 127, %v95_v48  ;;  %vm174_vm1 = vcmask 1043456  }
  0x40   :  { %v102_v7 = vmul.f32 %v101_v6, %v1460_v0  ;;  %v103_v8 = vmul.f32 %v101_v6, %v1462_v1  ;;  %v113_v12 = vstv %s1128_s16  ;;  %v108_v13 = vmul.f32 %v107_v11, %v1468_v3  ;;  %v1533_v55 = vld [vmem:[#allocation2 + $0x1c] sm:$0xf]  ;;  %v1538_v61 = vld [vmem:[#allocation2 + $0x24] sm:$0xff]  ;;  %v1540_v62 = vld [vmem:[#allocation2 + $0x2c] sm:$0xf]  ;;  %s1138_s2 = sld [smem:[#allocation6 + $0xc]] }
  0x41   :  { %v109_v14 = vmul.f32 %v107_v11, %v1466_v2  ;;  %v114_v15 = vmul.f32 %v113_v12, %v1470_v4  ;;  %v115_v16 = vmul.f32 %v113_v12, %v1472_v5  ;;  %v119_v19 = vstv %s1129_s17  ;;  %s1139_s26 = sld [smem:[#allocation6 + $0xf]]  ;;  %s1140_s27 = sld [smem:[#allocation6 + $0x12]] }
  0x42   :  { %v125_v20 = vstv %s1458_s18  ;;  %v110_v21 = vadd.f32 %v108_v13, %v102_v7  ;;  %v120_v23 = vmul.f32 %v119_v19, %v1478_v9  ;;  %v121_v24 = vmul.f32 %v119_v19, %v1480_v10  ;;  %v1545_v13 = vld [vmem:[#allocation2 + $0x34] sm:$0xff]  ;;  %s1141_s28 = sld [smem:[#allocation6 + $0x15]]  ;;  %s1143_s30 = sld [smem:[#allocation6 + $0x10]] }
  0x43   :  { %v111_v22 = vadd.f32 %v109_v14, %v103_v8  ;;  %v131_v27 = vstv %s1464_s19  ;;  %v126_v30 = vmul.f32 %v125_v20, %v1488_v17  ;;  %v127_v31 = vmul.f32 %v125_v20, %v1490_v18  ;;  %v1547_v14 = vld [vmem:[#allocation2 + $0x3c] sm:$0xf]  ;;  %s1142_s29 = sld [smem:[#allocation6 + $0xd]]  ;;  %s1144_s5 = sld [smem:[#allocation6 + $0x13]] }
  0x44   :  { %v116_v28 = vadd.f32 %v114_v15, %v110_v21  ;;  %v137_v34 = vstv %s1474_s20  ;;  %v132_v37 = vmul.f32 %v131_v27, %v1497_v25  ;;  %v133_v38 = vmul.f32 %v131_v27, %v1499_v26  ;;  %s1145_s6 = sld [smem:[#allocation6 + $0x16]]  ;;  %s1147_s8 = sld [smem:[#allocation6 + $0x11]] }
  0x45   :  { %v117_v29 = vadd.f32 %v115_v16, %v111_v22  ;;  %v143_v41 = vstv %s1482_s21  ;;  %v138_v44 = vmul.f32 %v137_v34, %v1506_v32  ;;  %v139_v45 = vmul.f32 %v137_v34, %v1508_v33  ;;  %s1146_s7 = sld [smem:[#allocation6 + $0xe]]  ;;  %s1148_s9 = sld [smem:[#allocation6 + $0x14]] }
  0x46   :  { %v122_v35 = vadd.f32 %v120_v23, %v116_v28  ;;  %v149_v49 = vstv %s1493_s22  ;;  %v144_v52 = vmul.f32 %v143_v41, %v1515_v39  ;;  %v145_v53 = vmul.f32 %v143_v41, %v1517_v40  ;;  %s1149_s10 = sld [smem:[#allocation6 + $0x17]]  ;;  %s1152_s12 = sld [smem:[#allocation6 + $0x18]] }
  0x47   :  { %v123_v36 = vadd.f32 %v121_v24, %v117_v29  ;;  %v155_v56 = vstv %s1502_s23  ;;  %v150_v59 = vmul.f32 %v149_v49, %v1524_v46  ;;  %v151_v60 = vmul.f32 %v149_v49, %v1526_v47  ;;  %s1153_s13 = sld [smem:[#allocation6 + $0x1b]]  ;;  %s1154_s14 = sld [smem:[#allocation6 + $0x1e]] }
  0x48   :  { %v128_v42 = vadd.f32 %v126_v30, %v122_v35  ;;  %v161_v6 = vstv %s1511_s24  ;;  %v156_v11 = vmul.f32 %v155_v56, %v1531_v54  ;;  %v157_v12 = vmul.f32 %v155_v56, %v1533_v55  ;;  %s1155_s0 = sld [smem:[#allocation6 + $0x21]]  ;;  %s1157_s3 = sld [smem:[#allocation6 + $0x1c]] }
  0x49   :  { %v129_v43 = vadd.f32 %v127_v31, %v123_v36  ;;  %v167_v15 = vstv %s1520_s25  ;;  %v162_v20 = vmul.f32 %v161_v6, %v1538_v61  ;;  %v163_v21 = vmul.f32 %v161_v6, %v1540_v62  ;;  %s1156_s1 = sld [smem:[#allocation6 + $0x19]]  ;;  %s1158_s15 = sld [smem:[#allocation6 + $0x1f]] }
  0x4a   :  { %v134_v50 = vadd.f32 %v132_v37, %v128_v42  ;;  %vm97_vm0 = vcmp.lt.s32.totalorder %v96_v63, 32  ;;  %v168_v24 = vmul.f32 %v167_v15, %v1545_v13  ;;  %v169_v27 = vmul.f32 %v167_v15, %v1547_v14  ;;  %s1159_s16 = sld [smem:[#allocation6 + $0x22]]  ;;  %s1161_s18 = sld [smem:[#allocation6 + $0x1d]] }
  0x4b   :  { %v135_v51 = vadd.f32 %v133_v38, %v129_v43  ;;  %v1410_v30 = vmov 0.0   ;;  %v228_v42 = vstv %s1138_s2  ;;  %v234_v43 = vstv %s1139_s26  ;;  %s1160_s17 = sld [smem:[#allocation6 + $0x1a]]  ;;  %s1162_s19 = sld [smem:[#allocation6 + $0x20]] }
  0x4c   :  { %v140_v57 = vadd.f32 %v138_v44, %v134_v50  ;;  %v1554_v31 = vsel %vm97_vm0, 1.0, %v1410_v30  ;;  %v230_v44 = vmul.f32 %v228_v42, %v1462_v1  ;;  %v229_v48 = vmul.f32 %v228_v42, %v1460_v0  ;;  %s1163_s20 = sld [smem:[#allocation6 + $0x23]]  ;;  %s207_s23 = sld [smem:[#allocation7]] }
  0x4d   :  { %v141_v58 = vadd.f32 %v139_v45, %v135_v51  ;;  %v236_v45 = vmul.f32 %v234_v43, %v1466_v2  ;;  %v235_v49 = vmul.f32 %v234_v43, %v1468_v3  ;;  %v240_v50 = vstv %s1140_s27  ;;  %s214_s24 = sld [smem:[#allocation9]]  ;;  %s1166_s25 = sld [smem:[#allocation6 + $0x24]] }
  0x4e   :  { %v146_v7 = vadd.f32 %v144_v52, %v140_v57  ;;  %v242_v52 = vmul.f32 %v240_v50, %v1472_v5  ;;  %v241_v56 = vmul.f32 %v240_v50, %v1470_v4  ;;  %v246_v57 = vstv %s1141_s28  ;;  %s1167_s2 = sld [smem:[#allocation6 + $0x27]]  ;;  %s1168_s26 = sld [smem:[#allocation6 + $0x2a]] }
  0x4f   :  { %v147_v8 = vadd.f32 %v145_v53, %v141_v58  ;;  %v238_v51 = vadd.f32 %v236_v45, %v230_v44  ;;  %v237_v53 = vadd.f32 %v235_v49, %v229_v48  ;;  %v247_v63 = vmul.f32 %v246_v57, %v1478_v9  ;;  %s1169_s27 = sld [smem:[#allocation6 + $0x2d]] }
  0x50   :  { %v152_v16 = vadd.f32 %v150_v59, %v146_v7  ;;  %v248_v59 = vmul.f32 %v246_v57, %v1480_v10  ;;  %v252_v6 = vstv %s1142_s29  ;;  %v258_v15 = vstv %s1143_s30  ;;  %s1170_s28 = sld [smem:[#allocation6 + $0x25]]  ;;  %s1171_s29 = sld [smem:[#allocation6 + $0x28]] }
  0x51   :  { %v153_v19 = vadd.f32 %v151_v60, %v147_v8  ;;  %v244_v58 = vadd.f32 %v242_v52, %v238_v51  ;;  %v243_v60 = vadd.f32 %v241_v56, %v237_v53  ;;  %v254_v8 = vmul.f32 %v252_v6, %v1490_v18  ;;  %s1172_s30 = sld [smem:[#allocation6 + $0x2b]] }
  0x52   :  { %v158_v22 = vadd.f32 %v156_v11, %v152_v16  ;;  %v282_v48 = vstv %s1147_s8  ;;  %v288_v53 = vstv %s1148_s9  ;;  %s1176_s8 = sld [smem:[#allocation6 + $0x2c]]  ;;  %s1177_s9 = sld [smem:[#allocation6 + $0x2f]] }
  0x53   :  { %v159_v23 = vadd.f32 %v157_v12, %v153_v19  ;;  %v250_v7 = vadd.f32 %v248_v59, %v244_v58  ;;  %v249_v11 = vadd.f32 %v247_v63, %v243_v60  ;;  %v253_v12 = vmul.f32 %v252_v6, %v1488_v17 }
  0x54   :  { %v164_v28 = vadd.f32 %v162_v20, %v158_v22  ;;  %v260_v19 = vmul.f32 %v258_v15, %v1499_v26  ;;  %v264_v22 = vstv %s1144_s5  ;;  %v284_v50 = vmul.f32 %v282_v48, %v1533_v55  ;;  %s1173_s5 = sld [smem:[#allocation6 + $0x2e]] }
  0x55   :  { %v165_v29 = vadd.f32 %v163_v21, %v159_v23  ;;  %v256_v16 = vadd.f32 %v254_v8, %v250_v7  ;;  %v255_v20 = vadd.f32 %v253_v12, %v249_v11  ;;  %v259_v21 = vmul.f32 %v258_v15, %v1497_v25 }
  0x56   :  { %v1556_v34 = vadd.f32 %v168_v24, %v164_v28  ;;  %v266_v24 = vmul.f32 %v264_v22, %v1508_v33  ;;  %v265_v28 = vmul.f32 %v264_v22, %v1506_v32  ;;  %v283_v52 = vmul.f32 %v282_v48, %v1531_v54 }
  0x57   :  { %v1558_v35 = vadd.f32 %v169_v27, %v165_v29  ;;  %v262_v23 = vadd.f32 %v260_v19, %v256_v16  ;;  %v261_v27 = vadd.f32 %v259_v21, %v255_v20  ;;  %v270_v29 = vstv %s1145_s6  ;;  %s1174_s6 = sld [smem:[#allocation6 + $0x26]] }
  0x58   :  { %v172_v36 = vmul.f32 %v1554_v31, %v1556_v34  ;;  %v290_v57 = vmul.f32 %v288_v53, %v1540_v62  ;;  %v289_v59 = vmul.f32 %v288_v53, %v1538_v61  ;;  %v294_v60 = vstv %s1149_s10 }
  0x59   :  { %v173_v37 = vmul.f32 %v1554_v31, %v1558_v35  ;;  %v268_v30 = vadd.f32 %v266_v24, %v262_v23  ;;  %v296_v6 = vmul.f32 %v294_v60, %v1547_v14  ;;  %v295_v8 = vmul.f32 %v294_v60, %v1545_v13 }
  0x5a   :  { %v366_v53 = vstv %s1154_s14  ;;  %v372_v60 = vstv %s1155_s0  ;;  %s1180_s14 = sld [smem:[#allocation6 + $0x30]]  ;;  %s1181_s0 = sld [smem:[#allocation6 + $0x33]] }
  0x5b   :  { %v175_v38 = vsel %vm174_vm1, %v173_v37, 0.0  ;;  %v267_v37 = vadd.f32 %v265_v28, %v261_v27 }
  0x5c   :  { %v176_v41 = vadd.f32 %v175_v38, %v172_v36  ;;  %v272_v36 = vmul.f32 %v270_v29, %v1517_v40  ;;  %v271_v38 = vmul.f32 %v270_v29, %v1515_v39 }
  0x5e   :  { %177 = vadd.xlane.f32.xlu0 %v176_v41  ;;  %v276_v41 = vstv %s1146_s7  ;;  %v274_v42 = vadd.f32 %v272_v36, %v268_v30  ;;  %v273_v44 = vadd.f32 %v271_v38, %v267_v37  ;;  %s1175_s7 = sld [smem:[#allocation6 + $0x29]] }
  0x5f   :  { %v278_v43 = vmul.f32 %v276_v41, %v1526_v47  ;;  %v277_v45 = vmul.f32 %v276_v41, %v1524_v46 }
  0x61   :  { %v280_v49 = vadd.f32 %v278_v43, %v274_v42  ;;  %v279_v51 = vadd.f32 %v277_v45, %v273_v44 }
  0x63   :  { %v286_v56 = vadd.f32 %v284_v50, %v280_v49  ;;  %v285_v58 = vadd.f32 %v283_v52, %v279_v51 }
  0x65   :  { %v292_v63 = vadd.f32 %v290_v57, %v286_v56  ;;  %v291_v7 = vadd.f32 %v289_v59, %v285_v58  ;;  %v368_v57 = vmul.f32 %v366_v53, %v1472_v5  ;;  %v367_v59 = vmul.f32 %v366_v53, %v1470_v4 }
  0x66   :  { %v408_v53 = vstv %s1161_s18  ;;  %s1187_s18 = sld [smem:[#allocation6 + $0x3a]] }
  0x67   :  { %v1589_v11 = vadd.f32 %v296_v6, %v292_v63  ;;  %v1591_v12 = vadd.f32 %v295_v8, %v291_v7  ;;  %v374_v6 = vmul.f32 %v372_v60, %v1480_v10  ;;  %v373_v8 = vmul.f32 %v372_v60, %v1478_v9 }
  0x68   :  { %v414_v60 = vstv %s1162_s19  ;;  %s1188_s19 = sld [smem:[#allocation6 + $0x32]] }
  0x69   :  { %v300_v15 = vmul.f32 %v1554_v31, %v1589_v11  ;;  %v299_v16 = vmul.f32 %v1554_v31, %v1591_v12 }
  0x6b   :  { %v301_v19 = vsel %vm174_vm1, %v300_v15, 0.0  ;;  %v378_v15 = vstv %s1156_s1  ;;  %s1182_s1 = sld [smem:[#allocation6 + $0x36]] }
  0x6c   :  { %v302_v20 = vadd.f32 %v301_v19, %v299_v16  ;;  %v380_v19 = vmul.f32 %v378_v15, %v1490_v18 }
  0x6e   :  { %303 = vadd.xlane.f32.xlu1 %v302_v20 }
  0xeb   :  { %v178_v21 = vpop.xlane.xlu0 %177 }
  0xec   :  { %v179_v22 = vrot.slane %v178_v21, 4 }
  0xee   :  { %v180_v23 = vadd.f32 %v179_v22, %v178_v21  ;;  %v379_v21 = vmul.f32 %v378_v15, %v1488_v17  ;;  %v384_v22 = vstv %s1157_s3  ;;  %v420_v15 = vstv %s1163_s20  ;;  %s1183_s3 = sld [smem:[#allocation6 + $0x39]]  ;;  %s1189_s20 = sld [smem:[#allocation6 + $0x35]] }
  0xf0   :  { %v181_v24 = vrot.slane %v180_v23, 2 }
  0xf2   :  { %v182_v27 = vadd.f32 %v181_v24, %v180_v23  ;;  %v386_v24 = vmul.f32 %v384_v22, %v1499_v26 }
  0xf4   :  { %v183_v28 = vrot.slane %v182_v27, 1 }
  0xf6   :  { %v184_v29 = vadd.f32 %v183_v28, %v182_v27  ;;  %v385_v28 = vmul.f32 %v384_v22, %v1497_v25 }
  0xf8   :  { %1236 = vpush %v184_v29  ;;  %v390_v29 = vstv %s1158_s15  ;;  %s1184_s15 = sld [smem:[#allocation6 + $0x31]] }
 0x129   :  { %s1237_s11 = spop %1236 }
 0x12a   :  { %v186_v30 = vstv %s1237_s11 }
 0x12b   :  { %v187_v36 = vmul.f32 0.0026041667, %v186_v30 }
 0x12d   :  { %v1599_v37 = vsub.f32 %v1556_v34, %v187_v36  ;;  %v1602_v38 = vsub.f32 %v1558_v35, %v187_v36  ;;  %v354_v34 = vstv %s1152_s12  ;;  %v360_v35 = vstv %s1153_s13  ;;  %s1150_s12 = sld [smem:[#allocation7 + $0x1]] }
 0x12e   :  { %v356_v49 = vmul.f32 %v354_v34, %v1462_v1  ;;  %v362_v50 = vmul.f32 %v360_v35, %v1466_v2  ;;  %v355_v51 = vmul.f32 %v354_v34, %v1460_v0  ;;  %v361_v52 = vmul.f32 %v360_v35, %v1468_v3  ;;  %s1151_s13 = sld [smem:[#allocation9 + $0x1]] }
 0x12f   :  { %v190_v41 = vmul.f32 %v1599_v37, %v1599_v37  ;;  %v191_v42 = vmul.f32 %v1602_v38, %v1602_v38  ;;  %v392_v36 = vmul.f32 %v390_v29, %v1508_v33  ;;  %v402_v35 = vstv %s1160_s17  ;;  %s1186_s17 = sld [smem:[#allocation6 + $0x37]] }
 0x130   :  { %v364_v56 = vadd.f32 %v362_v50, %v356_v49  ;;  %v363_v58 = vadd.f32 %v361_v52, %v355_v51  ;;  %v404_v50 = vmul.f32 %v402_v35, %v1526_v47  ;;  %v403_v52 = vmul.f32 %v402_v35, %v1524_v46 }
 0x131   :  { %v192_v43 = vmul.f32 %v1554_v31, %v190_v41  ;;  %v193_v44 = vmul.f32 %v1554_v31, %v191_v42  ;;  %v391_v42 = vmul.f32 %v390_v29, %v1506_v32 }
 0x132   :  { %v370_v63 = vadd.f32 %v368_v57, %v364_v56  ;;  %v369_v7 = vadd.f32 %v367_v59, %v363_v58  ;;  %v410_v57 = vmul.f32 %v408_v53, %v1533_v55  ;;  %v409_v59 = vmul.f32 %v408_v53, %v1531_v54 }
 0x133   :  { %v194_v45 = vsel %vm174_vm1, %v193_v44, 0.0 }
 0x134   :  { %v195_v48 = vadd.f32 %v194_v45, %v192_v43  ;;  %v376_v16 = vadd.f32 %v374_v6, %v370_v63  ;;  %v375_v20 = vadd.f32 %v373_v8, %v369_v7  ;;  %v396_v43 = vstv %s1159_s16  ;;  %s1185_s16 = sld [smem:[#allocation6 + $0x34]] }
 0x135   :  { %v398_v45 = vmul.f32 %v396_v43, %v1517_v40  ;;  %v397_v34 = vmul.f32 %v396_v43, %v1515_v39  ;;  %v416_v6 = vmul.f32 %v414_v60, %v1540_v62  ;;  %v415_v8 = vmul.f32 %v414_v60, %v1538_v61 }
 0x136   :  { %196 = vadd.xlane.f32.xlu0 %v195_v48  ;;  %v382_v23 = vadd.f32 %v380_v19, %v376_v16  ;;  %v381_v27 = vadd.f32 %v379_v21, %v375_v20  ;;  %v422_v19 = vmul.f32 %v420_v15, %v1547_v14  ;;  %v421_v21 = vmul.f32 %v420_v15, %v1545_v13 }
 0x138   :  { %v388_v30 = vadd.f32 %v386_v24, %v382_v23  ;;  %v387_v41 = vadd.f32 %v385_v28, %v381_v27 }
 0x13a   :  { %v394_v44 = vadd.f32 %v392_v36, %v388_v30  ;;  %v393_v48 = vadd.f32 %v391_v42, %v387_v41  ;;  %v304_v30 = vpop.xlane.xlu1 %303 }
 0x13b   :  { %v305_v36 = vrot.slane %v304_v30, 4 }
 0x13c   :  { %v400_v49 = vadd.f32 %v398_v45, %v394_v44  ;;  %v399_v51 = vadd.f32 %v397_v34, %v393_v48 }
 0x13d   :  { %v306_v41 = vadd.f32 %v305_v36, %v304_v30 }
 0x13e   :  { %v406_v56 = vadd.f32 %v404_v50, %v400_v49  ;;  %v405_v58 = vadd.f32 %v403_v52, %v399_v51 }
 0x13f   :  { %v307_v42 = vrot.slane %v306_v41, 2 }
 0x140   :  { %v412_v63 = vadd.f32 %v410_v57, %v406_v56  ;;  %v411_v7 = vadd.f32 %v409_v59, %v405_v58 }
 0x141   :  { %v308_v48 = vadd.f32 %v307_v42, %v306_v41 }
 0x142   :  { %v418_v16 = vadd.f32 %v416_v6, %v412_v63  ;;  %v417_v20 = vadd.f32 %v415_v8, %v411_v7 }
 0x143   :  { %v309_v49 = vrot.slane %v308_v48, 1 }
 0x144   :  { %v1635_v22 = vadd.f32 %v422_v19, %v418_v16  ;;  %v1637_v23 = vadd.f32 %v421_v21, %v417_v20  ;;  %v210_v19 = vstv %s207_s23  ;;  %v215_v21 = vstv %s214_s24 }
 0x145   :  { %v310_v52 = vadd.f32 %v309_v49, %v308_v48 }
 0x146   :  { %v426_v24 = vmul.f32 %v1554_v31, %v1635_v22  ;;  %v425_v27 = vmul.f32 %v1554_v31, %v1637_v23 }
 0x148   :  { %v427_v28 = vsel %vm174_vm1, %v426_v24, 0.0 }
 0x149   :  { %v428_v29 = vadd.f32 %v427_v28, %v425_v27 }
 0x14b   :  { %429 = vadd.xlane.f32.xlu0 %v428_v29 }
 0x1c3   :  { %v197_v43 = vpop.xlane.xlu0 %196 }
 0x1c4   :  { %v198_v44 = vrot.slane %v197_v43, 4 }
 0x1c6   :  { %v199_v45 = vadd.f32 %v198_v44, %v197_v43 }
 0x1c8   :  { %v200_v34 = vrot.slane %v199_v45, 2 }
 0x1ca   :  { %v201_v35 = vadd.f32 %v200_v34, %v199_v45  ;;  %v480_v34 = vstv %s1166_s25  ;;  %s1164_s25 = sld [smem:[#allocation7 + $0x2]] }
 0x1cb   :  { %v481_v49 = vmul.f32 %v480_v34, %v1460_v0 }
 0x1cc   :  { %v202_v50 = vrot.slane %v201_v35, 1 }
 0x1ce   :  { %v203_v51 = vadd.f32 %v202_v50, %v201_v35 }
 0x1d0   :  { %1238 = vpush %v203_v51  ;;  %v492_v51 = vstv %s1168_s26  ;;  %s1194_s26 = sld [smem:[#allocation6 + $0x3c]] }
 0x1d1   :  { %1240 = vpush %v310_v52 }
 0x201   :  { %s1239_s21 = spop %1238 }
 0x202   :  { %v205_v53 = vstv %s1239_s21  ;;  %s1241_s22 = spop %1240  ;;  %s1190_s21 = sld [smem:[#allocation6 + $0x38]] }
 0x203   :  { %v206_v56 = vmul.f32 0.0026041667, %v205_v53  ;;  %v312_v57 = vstv %s1241_s22  ;;  %v494_v53 = vmul.f32 %v492_v51, %v1472_v5  ;;  %s1191_s22 = sld [smem:[#allocation6 + $0x3b]] }
 0x204   :  { %v313_v58 = vmul.f32 0.0026041667, %v312_v57  ;;  %v493_v57 = vmul.f32 %v492_v51, %v1470_v4  ;;  %v534_v51 = vstv %s1175_s7  ;;  %s1201_s7 = sld [smem:[#allocation6 + $0x46]] }
 0x205   :  { %v208_v59 = vadd.f32 1e-05, %v206_v56 }
 0x206   :  { %v1645_v60 = vsub.f32 %v1591_v12, %v313_v58  ;;  %v1648_v63 = vsub.f32 %v1589_v11, %v313_v58  ;;  %v498_v58 = vstv %s1169_s27  ;;  %s1195_s27 = sld [smem:[#allocation6 + $0x3f]] }
 0x207   :  { %1276 = vrsqrt.f32 %v208_v59 }
 0x208   :  { %v316_v6 = vmul.f32 %v1645_v60, %v1645_v60  ;;  %v317_v7 = vmul.f32 %v1648_v63, %v1648_v63 }
 0x20a   :  { %v318_v8 = vmul.f32 %v1554_v31, %v316_v6  ;;  %v319_v15 = vmul.f32 %v1554_v31, %v317_v7  ;;  %v500_v6 = vmul.f32 %v498_v58, %v1480_v10 }
 0x20c   :  { %v320_v16 = vsel %vm174_vm1, %v319_v15, 0.0  ;;  %v504_v15 = vstv %s1170_s28  ;;  %s1196_s28 = sld [smem:[#allocation6 + $0x42]] }
 0x20d   :  { %v321_v12 = vadd.f32 %v320_v16, %v318_v8  ;;  %v499_v8 = vmul.f32 %v498_v58, %v1478_v9  ;;  %v540_v58 = vstv %s1176_s8  ;;  %s1202_s8 = sld [smem:[#allocation6 + $0x3e]] }
 0x20f   :  { %322 = vadd.xlane.f32.xlu1 %v321_v12  ;;  %v506_v12 = vmul.f32 %v504_v15, %v1490_v18 }
 0x211   :  { %v1277_v11 = vpop.eup %1276 }
 0x212   :  { %v211_v20 = vmul.f32 %v1277_v11, %v210_v19  ;;  %v505_v11 = vmul.f32 %v504_v15, %v1488_v17  ;;  %v546_v15 = vstv %s1177_s9  ;;  %s1203_s9 = sld [smem:[#allocation6 + $0x41]] }
 0x214   :  { %v212_v24 = vmul.f32 %v211_v20, %v1599_v37  ;;  %v213_v27 = vmul.f32 %v211_v20, %v1602_v38  ;;  %v486_v37 = vstv %s1167_s2  ;;  %v482_v38 = vmul.f32 %v480_v34, %v1462_v1  ;;  %s1165_s2 = sld [smem:[#allocation9 + $0x2]] }
 0x215   :  { %v488_v35 = vmul.f32 %v486_v37, %v1466_v2  ;;  %v487_v50 = vmul.f32 %v486_v37, %v1468_v3  ;;  %v510_v20 = vstv %s1171_s29  ;;  %v528_v37 = vstv %s1174_s6  ;;  %s1197_s29 = sld [smem:[#allocation6 + $0x45]]  ;;  %s1200_s6 = sld [smem:[#allocation6 + $0x43]] }
 0x216   :  { %v216_v28 = vadd.f32 %v215_v21, %v212_v24  ;;  %v217_v29 = vadd.f32 %v215_v21, %v213_v27  ;;  %v512_v24 = vmul.f32 %v510_v20, %v1499_v26 }
 0x217   :  { %v490_v52 = vadd.f32 %v488_v35, %v482_v38  ;;  %v489_v56 = vadd.f32 %v487_v50, %v481_v49  ;;  %v530_v35 = vmul.f32 %v528_v37, %v1526_v47  ;;  %v529_v50 = vmul.f32 %v528_v37, %v1524_v46 }
 0x218   :  { %v218_v30 = vsel %vm174_vm1, %v217_v29, -inf  ;;  %v516_v29 = vstv %s1172_s30  ;;  %s1758_s30 = sld [smem:[#allocation6 + $0x3d]] }
 0x219   :  { %v219_v36 = vmax.f32 %v216_v28, %v218_v30  ;;  %v496_v59 = vadd.f32 %v494_v53, %v490_v52  ;;  %v495_v7 = vadd.f32 %v493_v57, %v489_v56  ;;  %v511_v28 = vmul.f32 %v510_v20, %v1497_v25 }
 0x21a   :  { %v536_v53 = vmul.f32 %v534_v51, %v1533_v55  ;;  %v535_v57 = vmul.f32 %v534_v51, %v1531_v54 }
 0x21b   :  { %v220_v41 = vrot.slane %v219_v36, 4  ;;  %v502_v16 = vadd.f32 %v500_v6, %v496_v59  ;;  %v501_v19 = vadd.f32 %v499_v8, %v495_v7  ;;  %v542_v6 = vmul.f32 %v540_v58, %v1540_v62 }
 0x21c   :  { %v541_v8 = vmul.f32 %v540_v58, %v1538_v61 }
 0x21d   :  { %v221_v42 = vmax.f32 %v219_v36, %v220_v41  ;;  %v508_v21 = vadd.f32 %v506_v12, %v502_v16  ;;  %v507_v27 = vadd.f32 %v505_v11, %v501_v19  ;;  %v518_v36 = vmul.f32 %v516_v29, %v1508_v33 }
 0x21e   :  { %v548_v12 = vmul.f32 %v546_v15, %v1547_v14  ;;  %v547_v11 = vmul.f32 %v546_v15, %v1545_v13 }
 0x21f   :  { %v222_v43 = vrot.slane %v221_v42, 2  ;;  %v514_v30 = vadd.f32 %v512_v24, %v508_v21  ;;  %v513_v41 = vadd.f32 %v511_v28, %v507_v27 }
 0x221   :  { %v223_v44 = vmax.f32 %v221_v42, %v222_v43  ;;  %v517_v42 = vmul.f32 %v516_v29, %v1506_v32  ;;  %v522_v43 = vstv %s1173_s5  ;;  %s1199_s5 = sld [smem:[#allocation6 + $0x40]] }
 0x222   :  { %v523_v34 = vmul.f32 %v522_v43, %v1515_v39 }
 0x223   :  { %v224_v45 = vrot.slane %v223_v44, 1 }
 0x225   :  { %v225_v48 = vmax.f32 %v223_v44, %v224_v45  ;;  %v520_v44 = vadd.f32 %v518_v36, %v514_v30  ;;  %v524_v45 = vmul.f32 %v522_v43, %v1517_v40  ;;  %v430_v30 = vpop.xlane.xlu0 %429 }
 0x226   :  { %v431_v36 = vrot.slane %v430_v30, 4 }
 0x227   :  { %226 = vst [vmem:[#allocation10] sm:$0x1] %v225_v48  ;;  %v519_v48 = vadd.f32 %v517_v42, %v513_v41  ;;  %v526_v38 = vadd.f32 %v524_v45, %v520_v44 }
 0x228   :  { %v432_v41 = vadd.f32 %v431_v36, %v430_v30 }
 0x229   :  { %v525_v49 = vadd.f32 %v523_v34, %v519_v48  ;;  %v532_v52 = vadd.f32 %v530_v35, %v526_v38 }
 0x22a   :  { %v433_v42 = vrot.slane %v432_v41, 2 }
 0x22b   :  { %v531_v56 = vadd.f32 %v529_v50, %v525_v49  ;;  %v538_v59 = vadd.f32 %v536_v53, %v532_v52 }
 0x22c   :  { %v434_v48 = vadd.f32 %v433_v42, %v432_v41 }
 0x22d   :  { %v537_v7 = vadd.f32 %v535_v57, %v531_v56  ;;  %v544_v16 = vadd.f32 %v542_v6, %v538_v59 }
 0x22e   :  { %v435_v38 = vrot.slane %v434_v48, 1 }
 0x22f   :  { %v543_v19 = vadd.f32 %v541_v8, %v537_v7  ;;  %v1684_v20 = vadd.f32 %v548_v12, %v544_v16  ;;  %v336_v12 = vstv %s1150_s12 }
 0x230   :  { %v436_v50 = vadd.f32 %v435_v38, %v434_v48 }
 0x231   :  { %v1686_v21 = vadd.f32 %v547_v11, %v543_v19  ;;  %v552_v24 = vmul.f32 %v1554_v31, %v1684_v20  ;;  %v341_v11 = vstv %s1151_s13 }
 0x233   :  { %v551_v27 = vmul.f32 %v1554_v31, %v1686_v21  ;;  %v553_v28 = vsel %vm174_vm1, %v552_v24, 0.0 }
 0x235   :  { %v554_v29 = vadd.f32 %v553_v28, %v551_v27 }
 0x237   :  { %555 = vadd.xlane.f32.xlu0 %v554_v29 }
 0x29c   :  { %v323_v43 = vpop.xlane.xlu1 %322 }
 0x29d   :  { %v324_v44 = vrot.slane %v323_v43, 4 }
 0x29f   :  { %v325_v45 = vadd.f32 %v324_v44, %v323_v43 }
 0x2a1   :  { %v326_v34 = vrot.slane %v325_v45, 2 }
 0x2a3   :  { %v327_v37 = vadd.f32 %v326_v34, %v325_v45  ;;  %v606_v34 = vstv %s1180_s14  ;;  %s1178_s14 = sld [smem:[#allocation7 + $0x3]] }
 0x2a4   :  { %v607_v38 = vmul.f32 %v606_v34, %v1460_v0 }
 0x2a5   :  { %v328_v35 = vrot.slane %v327_v37, 1 }
 0x2a7   :  { %v329_v49 = vadd.f32 %v328_v35, %v327_v37 }
 0x2a9   :  { %1242 = vpush %v329_v49  ;;  %v618_v49 = vstv %s1182_s1  ;;  %s1208_s1 = sld [smem:[#allocation6 + $0x48]] }
 0x2aa   :  { %1244 = vpush %v436_v50 }
 0x2da   :  { %s1243_s10 = spop %1242 }
 0x2db   :  { %v331_v51 = vstv %s1243_s10  ;;  %s1245_s11 = spop %1244  ;;  %s1204_s10 = sld [smem:[#allocation6 + $0x44]] }
 0x2dc   :  { %v332_v52 = vmul.f32 0.0026041667, %v331_v51  ;;  %v438_v53 = vstv %s1245_s11  ;;  %v620_v51 = vmul.f32 %v618_v49, %v1472_v5  ;;  %v636_v5 = vstv %s1185_s16  ;;  %s1205_s11 = sld [smem:[#allocation6 + $0x47]]  ;;  %s1211_s16 = sld [smem:[#allocation6 + $0x51]] }
 0x2dd   :  { %v439_v56 = vmul.f32 0.0026041667, %v438_v53  ;;  %v619_v53 = vmul.f32 %v618_v49, %v1470_v4  ;;  %v638_v4 = vmul.f32 %v636_v5, %v1499_v26  ;;  %v654_v26 = vstv %s1188_s19  ;;  %s1214_s19 = sld [smem:[#allocation6 + $0x4f]] }
 0x2de   :  { %v334_v57 = vadd.f32 1e-05, %v332_v52 }
 0x2df   :  { %v1694_v58 = vsub.f32 %v1637_v23, %v439_v56  ;;  %v1697_v59 = vsub.f32 %v1635_v22, %v439_v56  ;;  %v624_v56 = vstv %s1183_s3  ;;  %s1209_s3 = sld [smem:[#allocation6 + $0x4b]] }
 0x2e0   :  { %1278 = vrsqrt.f32 %v334_v57 }
 0x2e1   :  { %v442_v6 = vmul.f32 %v1694_v58, %v1694_v58  ;;  %v443_v7 = vmul.f32 %v1697_v59, %v1697_v59 }
 0x2e3   :  { %v444_v8 = vmul.f32 %v1554_v31, %v442_v6  ;;  %v445_v15 = vmul.f32 %v1554_v31, %v443_v7  ;;  %v626_v6 = vmul.f32 %v624_v56, %v1480_v10  ;;  %v630_v7 = vstv %s1184_s15  ;;  %s1210_s15 = sld [smem:[#allocation6 + $0x4e]] }
 0x2e4   :  { %v642_v10 = vstv %s1186_s17  ;;  %s1212_s17 = sld [smem:[#allocation6 + $0x49]] }
 0x2e5   :  { %v446_v16 = vsel %vm174_vm1, %v445_v15, 0.0  ;;  %v631_v15 = vmul.f32 %v630_v7, %v1488_v17 }
 0x2e6   :  { %v447_v23 = vadd.f32 %v446_v16, %v444_v8 }
 0x2e8   :  { %448 = vadd.xlane.f32.xlu1 %v447_v23 }
 0x2ea   :  { %v1279_v22 = vpop.eup %1278 }
 0x2eb   :  { %v337_v19 = vmul.f32 %v1279_v22, %v336_v12  ;;  %v637_v12 = vmul.f32 %v636_v5, %v1497_v25  ;;  %v656_v25 = vmul.f32 %v654_v26, %v1526_v47 }
 0x2ed   :  { %v338_v24 = vmul.f32 %v337_v19, %v1645_v60  ;;  %v339_v27 = vmul.f32 %v337_v19, %v1648_v63  ;;  %v612_v60 = vstv %s1181_s0  ;;  %v608_v63 = vmul.f32 %v606_v34, %v1462_v1  ;;  %s1179_s0 = sld [smem:[#allocation9 + $0x3]] }
 0x2ee   :  { %v614_v37 = vmul.f32 %v612_v60, %v1466_v2  ;;  %v613_v35 = vmul.f32 %v612_v60, %v1468_v3  ;;  %v625_v2 = vmul.f32 %v624_v56, %v1478_v9  ;;  %v632_v3 = vmul.f32 %v630_v7, %v1490_v18 }
 0x2ef   :  { %v342_v28 = vadd.f32 %v341_v11, %v338_v24  ;;  %v343_v29 = vadd.f32 %v341_v11, %v339_v27  ;;  %v644_v9 = vmul.f32 %v642_v10, %v1508_v33  ;;  %v643_v11 = vmul.f32 %v642_v10, %v1506_v32 }
 0x2f0   :  { %v616_v50 = vadd.f32 %v614_v37, %v608_v63  ;;  %v615_v52 = vadd.f32 %v613_v35, %v607_v38  ;;  %v648_v18 = vstv %s1187_s18  ;;  %v660_v33 = vstv %s1189_s20  ;;  %v556_v35 = vpop.xlane.xlu0 %555  ;;  %s1213_s18 = sld [smem:[#allocation6 + $0x4c]]  ;;  %s1215_s20 = sld [smem:[#allocation6 + $0x52]] }
 0x2f1   :  { %v344_v30 = vsel %vm174_vm1, %v343_v29, -inf  ;;  %v650_v17 = vmul.f32 %v648_v18, %v1517_v40  ;;  %v662_v32 = vmul.f32 %v660_v33, %v1533_v55  ;;  %v672_v34 = vstv %s1191_s22  ;;  %s1217_s22 = sld [smem:[#allocation6 + $0x4d]] }
 0x2f2   :  { %v345_v36 = vmax.f32 %v342_v28, %v344_v30  ;;  %v622_v57 = vadd.f32 %v620_v51, %v616_v50  ;;  %v621_v1 = vadd.f32 %v619_v53, %v615_v52  ;;  %v649_v28 = vmul.f32 %v648_v18, %v1515_v39 }
 0x2f3   :  { %v674_v47 = vmul.f32 %v672_v34, %v1547_v14  ;;  %v557_v49 = vrot.slane %v556_v35, 4  ;;  %v467_v18 = vstv %s1165_s2 }
 0x2f4   :  { %v346_v41 = vrot.slane %v345_v36, 4  ;;  %v628_v0 = vadd.f32 %v626_v6, %v622_v57  ;;  %v627_v8 = vadd.f32 %v625_v2, %v621_v1 }
 0x2f5   :  { %v558_v14 = vadd.f32 %v557_v49, %v556_v35  ;;  %v1778_v49 = vld [vmem:[#allocation2 + $0x38] sm:$0xf] }
 0x2f6   :  { %v347_v42 = vmax.f32 %v345_v36, %v346_v41  ;;  %v634_v16 = vadd.f32 %v632_v3, %v628_v0  ;;  %v633_v23 = vadd.f32 %v631_v15, %v627_v8  ;;  %v655_v36 = vmul.f32 %v654_v26, %v1524_v46 }
 0x2f7   :  { %v673_v46 = vmul.f32 %v672_v34, %v1545_v13  ;;  %v559_v50 = vrot.slane %v558_v14, 2 }
 0x2f8   :  { %v348_v43 = vrot.slane %v347_v42, 2  ;;  %v640_v22 = vadd.f32 %v638_v4, %v634_v16  ;;  %v639_v19 = vadd.f32 %v637_v12, %v633_v23 }
 0x2f9   :  { %v560_v53 = vadd.f32 %v559_v50, %v558_v14 }
 0x2fa   :  { %v349_v44 = vmax.f32 %v347_v42, %v348_v43  ;;  %v646_v24 = vadd.f32 %v644_v9, %v640_v22  ;;  %v645_v27 = vadd.f32 %v643_v11, %v639_v19  ;;  %v661_v43 = vmul.f32 %v660_v33, %v1531_v54 }
 0x2fb   :  { %v561_v6 = vrot.slane %v560_v53, 1  ;;  %v462_v19 = vstv %s1164_s25 }
 0x2fc   :  { %v350_v45 = vrot.slane %v349_v44, 1  ;;  %v652_v29 = vadd.f32 %v650_v17, %v646_v24  ;;  %v651_v30 = vadd.f32 %v649_v28, %v645_v27 }
 0x2fd   :  { %v562_v7 = vadd.f32 %v561_v6, %v560_v53 }
 0x2fe   :  { %v351_v48 = vmax.f32 %v349_v44, %v350_v45  ;;  %v658_v41 = vadd.f32 %v656_v25, %v652_v29  ;;  %v657_v42 = vadd.f32 %v655_v36, %v651_v30  ;;  %v666_v44 = vstv %s1190_s21  ;;  %s1216_s21 = sld [smem:[#allocation6 + $0x4a]] }
 0x2ff   :  { %v668_v45 = vmul.f32 %v666_v44, %v1540_v62 }
 0x300   :  { %352 = vst [vmem:[#allocation10 + $0x1] sm:$0x1] %v351_v48  ;;  %v664_v40 = vadd.f32 %v662_v32, %v658_v41  ;;  %v663_v39 = vadd.f32 %v661_v43, %v657_v42  ;;  %v667_v48 = vmul.f32 %v666_v44, %v1538_v61  ;;  %v732_v42 = vstv %s1194_s26  ;;  %v1763_v44 = vld [vmem:[#allocation2 + $0x18] sm:$0xf]  ;;  %s1192_s26 = sld [smem:[#allocation7 + $0x4]] }
 0x302   :  { %v670_v60 = vadd.f32 %v668_v45, %v664_v40  ;;  %v669_v63 = vadd.f32 %v667_v48, %v663_v39  ;;  %v1766_v45 = vld [vmem:[#allocation2] sm:$0xff]  ;;  %v1769_v48 = vld [vmem:[#allocation2 + $0x10] sm:$0xff] }
 0x303   :  { %v733_v39 = vmul.f32 %v1766_v45, %v732_v42 }
 0x304   :  { %v1733_v37 = vadd.f32 %v674_v47, %v670_v60  ;;  %v1735_v55 = vadd.f32 %v673_v46, %v669_v63  ;;  %v744_v60 = vstv %s1196_s28  ;;  %v1772_v63 = vld [vmem:[#allocation2 + $0x28] sm:$0xf]  ;;  %s1222_s28 = sld [smem:[#allocation6 + $0x54]] }
 0x305   :  { %v746_v46 = vmul.f32 %v1772_v63, %v744_v60 }
 0x306   :  { %v678_v54 = vmul.f32 %v1554_v31, %v1733_v37  ;;  %v677_v62 = vmul.f32 %v1554_v31, %v1735_v55 }
 0x308   :  { %v679_v38 = vsel %vm174_vm1, %v678_v54, 0.0 }
 0x309   :  { %v680_v61 = vadd.f32 %v679_v38, %v677_v62  ;;  %v1775_v62 = vld [vmem:[#allocation2 + $0x20] sm:$0xff] }
 0x30a   :  { %v745_v38 = vmul.f32 %v1775_v62, %v744_v60 }
 0x30b   :  { %681 = vadd.xlane.f32.xlu0 %v680_v61  ;;  %v750_v61 = vstv %s1197_s29  ;;  %s1223_s29 = sld [smem:[#allocation6 + $0x57]] }
 0x30c   :  { %v752_v14 = vmul.f32 %v1778_v49, %v750_v61 }
 0x375   :  { %v449_v51 = vpop.xlane.xlu1 %448 }
 0x376   :  { %v450_v13 = vrot.slane %v449_v51, 4 }
 0x378   :  { %v451_v52 = vadd.f32 %v450_v13, %v449_v51  ;;  %v1781_v51 = vld [vmem:[#allocation2 + $0x30] sm:$0xff] }
 0x379   :  { %v751_v13 = vmul.f32 %v1781_v51, %v750_v61 }
 0x37a   :  { %v452_v56 = vrot.slane %v451_v52, 2 }
 0x37c   :  { %v453_v57 = vadd.f32 %v452_v56, %v451_v52  ;;  %v756_v52 = vstv %s1758_s30  ;;  %v1785_v56 = vld [vmem:[#allocation2 + $0xa] sm:$0xf]  ;;  %s1224_s30 = sld [smem:[#allocation6 + $0x5a]] }
 0x37e   :  { %v454_v1 = vrot.slane %v453_v57, 1 }
 0x380   :  { %v455_v2 = vadd.f32 %v454_v1, %v453_v57  ;;  %v758_v57 = vmul.f32 %v1785_v56, %v756_v52  ;;  %v1788_v1 = vld [vmem:[#allocation2 + $0x2] sm:$0xff] }
 0x382   :  { %1246 = vpush %v455_v2  ;;  %v757_v2 = vmul.f32 %v1788_v1, %v756_v52  ;;  %v1827_v52 = vld [vmem:[#allocation2 + $0x3c] sm:$0xf] }
 0x383   :  { %1248 = vpush %v562_v7  ;;  %v762_v7 = vstv %s1199_s5  ;;  %s1225_s5 = sld [smem:[#allocation6 + $0x5d]] }
 0x3b3   :  { %s1247_s23 = spop %1246 }
 0x3b4   :  { %v457_v0 = vstv %s1247_s23  ;;  %s1249_s24 = spop %1248  ;;  %s1218_s23 = sld [smem:[#allocation6 + $0x50]] }
 0x3b5   :  { %v458_v3 = vmul.f32 0.0026041667, %v457_v0  ;;  %v564_v8 = vstv %s1249_s24  ;;  %s1219_s24 = sld [smem:[#allocation6 + $0x53]] }
 0x3b6   :  { %v565_v15 = vmul.f32 0.0026041667, %v564_v8 }
 0x3b7   :  { %v460_v5 = vadd.f32 1e-05, %v458_v3  ;;  %v1791_v3 = vld [vmem:[#allocation2 + $0x1a] sm:$0xf] }
 0x3b8   :  { %v1743_v16 = vsub.f32 %v1686_v21, %v565_v15  ;;  %v1746_v4 = vsub.f32 %v1684_v20, %v565_v15  ;;  %v764_v8 = vmul.f32 %v1791_v3, %v762_v7 }
 0x3b9   :  { %1280 = vrsqrt.f32 %v460_v5  ;;  %v1794_v5 = vld [vmem:[#allocation2 + $0x12] sm:$0xff] }
 0x3ba   :  { %v568_v23 = vmul.f32 %v1743_v16, %v1743_v16  ;;  %v569_v12 = vmul.f32 %v1746_v4, %v1746_v4 }
 0x3bc   :  { %v570_v10 = vmul.f32 %v1554_v31, %v568_v23  ;;  %v571_v22 = vmul.f32 %v1554_v31, %v569_v12  ;;  %v763_v23 = vmul.f32 %v1794_v5, %v762_v7  ;;  %v768_v12 = vstv %s1200_s6  ;;  %s1226_s6 = sld [smem:[#allocation6 + $0x55]] }
 0x3be   :  { %v572_v9 = vsel %vm174_vm1, %v571_v22, 0.0  ;;  %v1797_v22 = vld [vmem:[#allocation2 + $0x2a] sm:$0xf] }
 0x3bf   :  { %v573_v21 = vadd.f32 %v572_v9, %v570_v10  ;;  %v770_v9 = vmul.f32 %v1797_v22, %v768_v12 }
 0x3c1   :  { %574 = vadd.xlane.f32.xlu1 %v573_v21 }
 0x3c3   :  { %v1281_v20 = vpop.eup %1280 }
 0x3c4   :  { %v463_v11 = vmul.f32 %v1281_v20, %v462_v19  ;;  %v1800_v19 = vld [vmem:[#allocation2 + $0x22] sm:$0xff] }
 0x3c5   :  { %v769_v20 = vmul.f32 %v1800_v19, %v768_v12 }
 0x3c6   :  { %v464_v24 = vmul.f32 %v463_v11, %v1694_v58  ;;  %v465_v17 = vmul.f32 %v463_v11, %v1697_v59  ;;  %v738_v58 = vstv %s1195_s27  ;;  %v1760_v59 = vld [vmem:[#allocation2 + $0x8] sm:$0xf]  ;;  %v774_v11 = vstv %s1201_s7  ;;  %s1193_s27 = sld [smem:[#allocation9 + $0x4]]  ;;  %s1227_s7 = sld [smem:[#allocation6 + $0x58]] }
 0x3c7   :  { %v734_v43 = vmul.f32 %v1760_v59, %v732_v42  ;;  %v740_v40 = vmul.f32 %v1763_v44, %v738_v58  ;;  %v739_v34 = vmul.f32 %v1769_v48, %v738_v58  ;;  %v786_v42 = vstv %s1203_s9  ;;  %s1229_s9 = sld [smem:[#allocation6 + $0x5e]] }
 0x3c8   :  { %v468_v27 = vadd.f32 %v467_v18, %v464_v24  ;;  %v469_v28 = vadd.f32 %v467_v18, %v465_v17  ;;  %v1803_v24 = vld [vmem:[#allocation2 + $0x3a] sm:$0xf] }
 0x3c9   :  { %v742_v47 = vadd.f32 %v740_v40, %v734_v43  ;;  %v741_v54 = vadd.f32 %v739_v34, %v733_v39  ;;  %v776_v17 = vmul.f32 %v1803_v24, %v774_v11  ;;  %v1815_v43 = vld [vmem:[#allocation2 + $0x1c] sm:$0xf]  ;;  %v1818_v34 = vld [vmem:[#allocation2 + $0x14] sm:$0xff] }
 0x3ca   :  { %v470_v26 = vsel %vm174_vm1, %v469_v28, -inf  ;;  %v1806_v28 = vld [vmem:[#allocation2 + $0x32] sm:$0xff]  ;;  %v788_v40 = vmul.f32 %v1815_v43, %v786_v42  ;;  %v787_v60 = vmul.f32 %v1818_v34, %v786_v42 }
 0x3cb   :  { %v471_v29 = vmax.f32 %v468_v27, %v470_v26  ;;  %v748_v35 = vadd.f32 %v746_v46, %v742_v47  ;;  %v747_v50 = vadd.f32 %v745_v38, %v741_v54  ;;  %v775_v26 = vmul.f32 %v1806_v28, %v774_v11  ;;  %v1821_v54 = vld [vmem:[#allocation2 + $0x2c] sm:$0xf] }
 0x3cc   :  { %v792_v47 = vstv %s1204_s10  ;;  %s1230_s10 = sld [smem:[#allocation6 + $0x56]] }
 0x3cd   :  { %v472_v25 = vrot.slane %v471_v29, 4  ;;  %v754_v53 = vadd.f32 %v752_v14, %v748_v35  ;;  %v753_v6 = vadd.f32 %v751_v13, %v747_v50  ;;  %v794_v38 = vmul.f32 %v1821_v54, %v792_v47  ;;  %v1824_v35 = vld [vmem:[#allocation2 + $0x24] sm:$0xff] }
 0x3ce   :  { %v793_v14 = vmul.f32 %v1824_v35, %v792_v47  ;;  %v798_v50 = vstv %s1205_s11  ;;  %s1231_s11 = sld [smem:[#allocation6 + $0x59]] }
 0x3cf   :  { %v473_v30 = vmax.f32 %v471_v29, %v472_v25  ;;  %v760_v0 = vadd.f32 %v758_v57, %v754_v53  ;;  %v759_v15 = vadd.f32 %v757_v2, %v753_v6  ;;  %v780_v29 = vstv %s1202_s8  ;;  %v1830_v6 = vld [vmem:[#allocation2 + $0x34] sm:$0xff]  ;;  %s1228_s8 = sld [smem:[#allocation6 + $0x5b]] }
 0x3d0   :  { %v800_v53 = vmul.f32 %v1827_v52, %v798_v50  ;;  %v799_v2 = vmul.f32 %v1830_v6, %v798_v50 }
 0x3d1   :  { %v474_v36 = vrot.slane %v473_v30, 2  ;;  %v766_v10 = vadd.f32 %v764_v8, %v760_v0  ;;  %v765_v21 = vadd.f32 %v763_v23, %v759_v15 }
 0x3d3   :  { %v475_v33 = vmax.f32 %v473_v30, %v474_v36  ;;  %v772_v18 = vadd.f32 %v770_v9, %v766_v10  ;;  %v771_v27 = vadd.f32 %v769_v20, %v765_v21  ;;  %v1809_v30 = vld [vmem:[#allocation2 + $0xc] sm:$0xf]  ;;  %v682_v10 = vpop.xlane.xlu0 %681 }
 0x3d4   :  { %v782_v36 = vmul.f32 %v1809_v30, %v780_v29  ;;  %v683_v9 = vrot.slane %v682_v10, 4 }
 0x3d5   :  { %v476_v41 = vrot.slane %v475_v33, 1  ;;  %v778_v25 = vadd.f32 %v776_v17, %v772_v18 }
 0x3d6   :  { %v684_v21 = vadd.f32 %v683_v9, %v682_v10 }
 0x3d7   :  { %v477_v32 = vmax.f32 %v475_v33, %v476_v41  ;;  %v777_v33 = vadd.f32 %v775_v26, %v771_v27  ;;  %v1812_v41 = vld [vmem:[#allocation2 + $0x4] sm:$0xff]  ;;  %v784_v58 = vadd.f32 %v782_v36, %v778_v25 }
 0x3d8   :  { %v685_v20 = vrot.slane %v684_v21, 2 }
 0x3d9   :  { %478 = vst [vmem:[#allocation10 + $0x2] sm:$0x1] %v477_v32  ;;  %v781_v32 = vmul.f32 %v1812_v41, %v780_v29  ;;  %v790_v46 = vadd.f32 %v788_v40, %v784_v58 }
 0x3da   :  { %v686_v27 = vadd.f32 %v685_v20, %v684_v21 }
 0x3db   :  { %v783_v39 = vadd.f32 %v781_v32, %v777_v33  ;;  %v796_v13 = vadd.f32 %v794_v38, %v790_v46 }
 0x3dc   :  { %v687_v25 = vrot.slane %v686_v27, 1 }
 0x3dd   :  { %v789_v61 = vadd.f32 %v787_v60, %v783_v39  ;;  %v1833_v7 = vadd.f32 %v800_v53, %v796_v13  ;;  %v588_v53 = vstv %s1178_s14 }
 0x3de   :  { %v688_v32 = vadd.f32 %v687_v25, %v686_v27 }
 0x3df   :  { %v795_v57 = vadd.f32 %v793_v14, %v789_v61  ;;  %v804_v8 = vmul.f32 %v1554_v31, %v1833_v7 }
 0x3e1   :  { %v1835_v0 = vadd.f32 %v799_v2, %v795_v57  ;;  %v805_v23 = vsel %vm174_vm1, %v804_v8, 0.0  ;;  %v593_v2 = vstv %s1179_s0 }
 0x3e3   :  { %v803_v15 = vmul.f32 %v1554_v31, %v1835_v0 }
 0x3e5   :  { %v806_v12 = vadd.f32 %v805_v23, %v803_v15 }
 0x3e7   :  { %807 = vadd.xlane.f32.xlu0 %v806_v12 }
 0x44e   :  { %v575_v11 = vpop.xlane.xlu1 %574 }
 0x44f   :  { %v576_v18 = vrot.slane %v575_v11, 4 }
 0x451   :  { %v577_v17 = vadd.f32 %v576_v18, %v575_v11 }
 0x453   :  { %v578_v26 = vrot.slane %v577_v17, 2 }
 0x455   :  { %v579_v29 = vadd.f32 %v578_v26, %v577_v17  ;;  %v858_v26 = vstv %s1208_s1  ;;  %s1206_s1 = sld [smem:[#allocation7 + $0x5]] }
 0x456   :  { %v859_v25 = vmul.f32 %v1766_v45, %v858_v26 }
 0x457   :  { %v580_v36 = vrot.slane %v579_v29, 1 }
 0x459   :  { %v581_v33 = vadd.f32 %v580_v36, %v579_v29 }
 0x45b   :  { %1250 = vpush %v581_v33  ;;  %v870_v33 = vstv %s1210_s15 }
 0x45c   :  { %1252 = vpush %v688_v32 }
 0x48c   :  { %s1251_s12 = spop %1250 }
 0x48d   :  { %v583_v42 = vstv %s1251_s12  ;;  %s1253_s13 = spop %1252  ;;  %s1232_s12 = sld [smem:[#allocation6 + $0x5c]] }
 0x48e   :  { %v584_v58 = vmul.f32 0.0026041667, %v583_v42  ;;  %v690_v40 = vstv %s1253_s13  ;;  %v872_v42 = vmul.f32 %v1772_v63, %v870_v33  ;;  %s1233_s13 = sld [smem:[#allocation6 + $0x5f]] }
 0x48f   :  { %v691_v39 = vmul.f32 0.0026041667, %v690_v40  ;;  %v871_v40 = vmul.f32 %v1775_v62, %v870_v33  ;;  %v912_v33 = vstv %s1217_s22  ;;  %s1411_s22 = smov [#allocation10]  }
 0x490   :  { %v586_v60 = vadd.f32 1e-05, %v584_v58 }
 0x491   :  { %v1843_v47 = vsub.f32 %v1735_v55, %v691_v39  ;;  %v1846_v46 = vsub.f32 %v1733_v37, %v691_v39  ;;  %v876_v39 = vstv %s1211_s16 }
 0x492   :  { %1282 = vrsqrt.f32 %v586_v60 }
 0x493   :  { %v694_v38 = vmul.f32 %v1843_v47, %v1843_v47  ;;  %v695_v61 = vmul.f32 %v1846_v46, %v1846_v46 }
 0x495   :  { %v696_v14 = vmul.f32 %v1554_v31, %v694_v38  ;;  %v697_v50 = vmul.f32 %v1554_v31, %v695_v61  ;;  %v878_v38 = vmul.f32 %v1778_v49, %v876_v39 }
 0x497   :  { %v698_v13 = vsel %vm174_vm1, %v697_v50, 0.0  ;;  %v882_v50 = vstv %s1212_s17  ;;  %s1220_s17 = sld [smem:[#allocation7 + $0x6]] }
 0x498   :  { %v699_v55 = vadd.f32 %v698_v13, %v696_v14  ;;  %v877_v14 = vmul.f32 %v1781_v51, %v876_v39  ;;  %v918_v39 = vstv %s1218_s23  ;;  %s1115_s23 = sshll.u32 %s1411_s22, 4  ;;  %s1116_s23 = int_to_ptr.vmem [resolvable:$true] %s1115_s23 }
 0x499   :  { %p1379_p10 = scmp.lt.s32.totalorder %s1116_s23, %s1116_s23 }
 0x49a   :  { %700 = vadd.xlane.f32.xlu1 %v699_v55  ;;  %v884_v55 = vmul.f32 %v1785_v56, %v882_v50 }
 0x49c   :  { %v1283_v37 = vpop.eup %1282 }
 0x49d   :  { %v589_v57 = vmul.f32 %v1283_v37, %v588_v53  ;;  %v883_v37 = vmul.f32 %v1788_v1, %v882_v50  ;;  %v924_v50 = vstv %s1219_s24  ;;  %s1374_s24 = scalar_lea.vmem %s1116_s23, 128 }
 0x49e   :  { %p1375_p9 = scmp.ne.s32.totalorder %s1116_s23, %s1374_s24  ;;  %p1380_p11 = scmp.lt.s32.totalorder %s1374_s24, %s1374_s24 }
 0x49f   :  { %v590_v8 = vmul.f32 %v589_v57, %v1743_v16  ;;  %v591_v15 = vmul.f32 %v589_v57, %v1746_v4  ;;  %v864_v16 = vstv %s1209_s3  ;;  %v860_v4 = vmul.f32 %v1760_v59, %v858_v26  ;;  %s1207_s3 = sld [smem:[#allocation9 + $0x5]] }
 0x4a0   :  { %v866_v29 = vmul.f32 %v1763_v44, %v864_v16  ;;  %v865_v36 = vmul.f32 %v1769_v48, %v864_v16  ;;  %v888_v57 = vstv %s1213_s18  ;;  %v906_v16 = vstv %s1216_s21  ;;  %s1221_s18 = sld [smem:[#allocation9 + $0x6]]  ;;  %s1235_s21 = sld [smem:[#allocation9 + $0x7]] }
 0x4a1   :  { %v594_v23 = vadd.f32 %v593_v2, %v590_v8  ;;  %v595_v12 = vadd.f32 %v593_v2, %v591_v15  ;;  %v890_v8 = vmul.f32 %v1791_v3, %v888_v57  ;;  %p1381_p12 = por %p1380_p11, %p1379_p10 }
 0x4a2   :  { %v868_v32 = vadd.f32 %v866_v29, %v860_v4  ;;  %v867_v58 = vadd.f32 %v865_v36, %v859_v25  ;;  %v908_v29 = vmul.f32 %v1809_v30, %v906_v16  ;;  %v907_v36 = vmul.f32 %v1812_v41, %v906_v16 }
 0x4a3   :  { %v596_v10 = vsel %vm174_vm1, %v595_v12, -inf  ;;  %v894_v12 = vstv %s1214_s19  ;;  %p1382_p13 = pnand %p1381_p12, %p1375_p9 }
 0x4a4   :  { %v597_v9 = vmax.f32 %v594_v23, %v596_v10  ;;  %v874_v60 = vadd.f32 %v872_v42, %v868_v32  ;;  %v873_v61 = vadd.f32 %v871_v40, %v867_v58  ;;  %v889_v23 = vmul.f32 %v1794_v5, %v888_v57 }
 0x4a5   :  { %v914_v42 = vmul.f32 %v1815_v43, %v912_v33  ;;  %v913_v40 = vmul.f32 %v1818_v34, %v912_v33 }
 0x4a6   :  { %v598_v21 = vrot.slane %v597_v9, 4  ;;  %v880_v13 = vadd.f32 %v878_v38, %v874_v60  ;;  %v879_v53 = vadd.f32 %v877_v14, %v873_v61  ;;  %v920_v38 = vmul.f32 %v1821_v54, %v918_v39 }
 0x4a7   :  { %v919_v14 = vmul.f32 %v1824_v35, %v918_v39 }
 0x4a8   :  { %v599_v20 = vmax.f32 %v597_v9, %v598_v21  ;;  %v886_v2 = vadd.f32 %v884_v55, %v880_v13  ;;  %v885_v15 = vadd.f32 %v883_v37, %v879_v53  ;;  %v896_v9 = vmul.f32 %v1797_v22, %v894_v12 }
 0x4a9   :  { %v926_v55 = vmul.f32 %v1827_v52, %v924_v50  ;;  %v925_v37 = vmul.f32 %v1830_v6, %v924_v50 }
 0x4aa   :  { %v600_v11 = vrot.slane %v599_v20, 2  ;;  %v892_v10 = vadd.f32 %v890_v8, %v886_v2  ;;  %v891_v21 = vadd.f32 %v889_v23, %v885_v15 }
 0x4ac   :  { %v601_v18 = vmax.f32 %v599_v20, %v600_v11  ;;  %v895_v20 = vmul.f32 %v1800_v19, %v894_v12  ;;  %v900_v11 = vstv %s1215_s20  ;;  %s1234_s20 = sld [smem:[#allocation7 + $0x7]] }
 0x4ad   :  { %v901_v26 = vmul.f32 %v1806_v28, %v900_v11 }
 0x4ae   :  { %v602_v17 = vrot.slane %v601_v18, 1 }
 0x4b0   :  { %v603_v27 = vmax.f32 %v601_v18, %v602_v17  ;;  %v898_v18 = vadd.f32 %v896_v9, %v892_v10  ;;  %v902_v17 = vmul.f32 %v1803_v24, %v900_v11  ;;  %v808_v10 = vpop.xlane.xlu0 %807 }
 0x4b1   :  { %v809_v9 = vrot.slane %v808_v10, 4 }
 0x4b2   :  { %604 = vst [vmem:[#allocation10 + $0x3] sm:$0x1] %v603_v27  ;;  %v897_v27 = vadd.f32 %v895_v20, %v891_v21  ;;  %v904_v4 = vadd.f32 %v902_v17, %v898_v18 }
 0x4b3   :  { %v810_v21 = vadd.f32 %v809_v9, %v808_v10 }
 0x4b4   :  { %v903_v25 = vadd.f32 %v901_v26, %v897_v27  ;;  %v910_v32 = vadd.f32 %v908_v29, %v904_v4 }
 0x4b5   :  { %v811_v20 = vrot.slane %v810_v21, 2 }
 0x4b6   :  { %v909_v58 = vadd.f32 %v907_v36, %v903_v25  ;;  %v916_v60 = vadd.f32 %v914_v42, %v910_v32 }
 0x4b7   :  { %v812_v27 = vadd.f32 %v811_v20, %v810_v21 }
 0x4b8   :  { %v915_v61 = vadd.f32 %v913_v40, %v909_v58  ;;  %v922_v13 = vadd.f32 %v920_v38, %v916_v60 }
 0x4b9   :  { %v813_v4 = vrot.slane %v812_v27, 1 }
 0x4ba   :  { %v921_v53 = vadd.f32 %v919_v14, %v915_v61  ;;  %v1882_v57 = vadd.f32 %v926_v55, %v922_v13  ;;  %v714_v55 = vstv %s1192_s26 }
 0x4bb   :  { %v814_v36 = vadd.f32 %v813_v4, %v812_v27 }
 0x4bc   :  { %v1884_v2 = vadd.f32 %v925_v37, %v921_v53  ;;  %v930_v8 = vmul.f32 %v1554_v31, %v1882_v57  ;;  %v719_v37 = vstv %s1193_s27 }
 0x4be   :  { %v929_v15 = vmul.f32 %v1554_v31, %v1884_v2  ;;  %v931_v23 = vsel %vm174_vm1, %v930_v8, 0.0 }
 0x4c0   :  { %v932_v12 = vadd.f32 %v931_v23, %v929_v15 }
 0x4c2   :  { %933 = vadd.xlane.f32.xlu0 %v932_v12 }
 0x527   :  { %v701_v11 = vpop.xlane.xlu1 %700 }
 0x528   :  { %v702_v18 = vrot.slane %v701_v11, 4 }
 0x52a   :  { %v703_v17 = vadd.f32 %v702_v18, %v701_v11 }
 0x52c   :  { %v704_v26 = vrot.slane %v703_v17, 2 }
 0x52e   :  { %v705_v16 = vadd.f32 %v704_v26, %v703_v17  ;;  %v984_v26 = vstv %s1222_s28 }
 0x52f   :  { %v985_v4 = vmul.f32 %v1766_v45, %v984_v26 }
 0x530   :  { %v706_v29 = vrot.slane %v705_v16, 1 }
 0x532   :  { %v707_v25 = vadd.f32 %v706_v29, %v705_v16 }
 0x534   :  { %1254 = vpush %v707_v25  ;;  %v996_v25 = vstv %s1224_s30 }
 0x535   :  { %1256 = vpush %v814_v36 }
 0x565   :  { %s1255_s25 = spop %1254 }
 0x566   :  { %v709_v33 = vstv %s1255_s25  ;;  %s1257_s2 = spop %1256 }
 0x567   :  { %v710_v32 = vmul.f32 0.0026041667, %v709_v33  ;;  %v816_v42 = vstv %s1257_s2  ;;  %v998_v33 = vmul.f32 %v1772_v63, %v996_v25  ;;  %v1014_v63 = vstv %s1227_s7 }
 0x568   :  { %v817_v58 = vmul.f32 0.0026041667, %v816_v42  ;;  %v997_v42 = vmul.f32 %v1775_v62, %v996_v25  ;;  %v1016_v62 = vmul.f32 %v1791_v3, %v1014_v63  ;;  %v1032_v3 = vstv %s1230_s10 }
 0x569   :  { %v712_v40 = vadd.f32 1e-05, %v710_v32 }
 0x56a   :  { %v1892_v39 = vsub.f32 %v1835_v0, %v817_v58  ;;  %v1895_v60 = vsub.f32 %v1833_v7, %v817_v58  ;;  %v1002_v58 = vstv %s1225_s5 }
 0x56b   :  { %1284 = vrsqrt.f32 %v712_v40 }
 0x56c   :  { %v820_v38 = vmul.f32 %v1892_v39, %v1892_v39  ;;  %v821_v61 = vmul.f32 %v1895_v60, %v1895_v60 }
 0x56e   :  { %v822_v14 = vmul.f32 %v1554_v31, %v820_v38  ;;  %v823_v50 = vmul.f32 %v1554_v31, %v821_v61  ;;  %v1004_v38 = vmul.f32 %v1778_v49, %v1002_v58  ;;  %v1008_v61 = vstv %s1226_s6 }
 0x56f   :  { %v1020_v49 = vstv %s1228_s8 }
 0x570   :  { %v824_v13 = vsel %vm174_vm1, %v823_v50, 0.0  ;;  %v1009_v50 = vmul.f32 %v1788_v1, %v1008_v61 }
 0x571   :  { %v825_v0 = vadd.f32 %v824_v13, %v822_v14 }
 0x573   :  { %826 = vadd.xlane.f32.xlu1 %v825_v0 }
 0x575   :  { %v1285_v7 = vpop.eup %1284 }
 0x576   :  { %v715_v53 = vmul.f32 %v1285_v7, %v714_v55  ;;  %v1015_v55 = vmul.f32 %v1794_v5, %v1014_v63  ;;  %v1034_v5 = vmul.f32 %v1809_v30, %v1032_v3 }
 0x578   :  { %v716_v8 = vmul.f32 %v715_v53, %v1843_v47  ;;  %v717_v15 = vmul.f32 %v715_v53, %v1846_v46  ;;  %v990_v47 = vstv %s1223_s29  ;;  %v986_v46 = vmul.f32 %v1760_v59, %v984_v26 }
 0x579   :  { %v992_v16 = vmul.f32 %v1763_v44, %v990_v47  ;;  %v991_v29 = vmul.f32 %v1769_v48, %v990_v47  ;;  %v1003_v44 = vmul.f32 %v1781_v51, %v1002_v58  ;;  %v1010_v48 = vmul.f32 %v1785_v56, %v1008_v61 }
 0x57a   :  { %v720_v23 = vadd.f32 %v719_v37, %v716_v8  ;;  %v721_v12 = vadd.f32 %v719_v37, %v717_v15  ;;  %v1022_v51 = vmul.f32 %v1797_v22, %v1020_v49  ;;  %v1021_v37 = vmul.f32 %v1800_v19, %v1020_v49 }
 0x57b   :  { %v994_v36 = vadd.f32 %v992_v16, %v986_v46  ;;  %v993_v32 = vadd.f32 %v991_v29, %v985_v4  ;;  %v1026_v56 = vstv %s1229_s9  ;;  %v1038_v22 = vstv %s1231_s11  ;;  %v934_v29 = vpop.xlane.xlu0 %933 }
 0x57c   :  { %v722_v10 = vsel %vm174_vm1, %v721_v12, -inf  ;;  %v1028_v1 = vmul.f32 %v1803_v24, %v1026_v56  ;;  %v1040_v19 = vmul.f32 %v1815_v43, %v1038_v22  ;;  %v1050_v26 = vstv %s1233_s13 }
 0x57d   :  { %v723_v9 = vmax.f32 %v720_v23, %v722_v10  ;;  %v1000_v40 = vadd.f32 %v998_v33, %v994_v36  ;;  %v999_v59 = vadd.f32 %v997_v42, %v993_v32  ;;  %v1027_v23 = vmul.f32 %v1806_v28, %v1026_v56 }
 0x57e   :  { %v1052_v30 = vmul.f32 %v1827_v52, %v1050_v26  ;;  %v935_v25 = vrot.slane %v934_v29, 4  ;;  %v845_v56 = vstv %s1207_s3 }
 0x57f   :  { %v724_v21 = vrot.slane %v723_v9, 4  ;;  %v1006_v45 = vadd.f32 %v1004_v38, %v1000_v40  ;;  %v1005_v14 = vadd.f32 %v1003_v44, %v999_v59 }
 0x580   :  { %v936_v52 = vadd.f32 %v935_v25, %v934_v29 }
 0x581   :  { %v725_v20 = vmax.f32 %v723_v9, %v724_v21  ;;  %v1012_v13 = vadd.f32 %v1010_v48, %v1006_v45  ;;  %v1011_v0 = vadd.f32 %v1009_v50, %v1005_v14  ;;  %v1033_v9 = vmul.f32 %v1812_v41, %v1032_v3 }
 0x582   :  { %v1051_v41 = vmul.f32 %v1830_v6, %v1050_v26  ;;  %v937_v36 = vrot.slane %v936_v52, 2 }
 0x583   :  { %v726_v11 = vrot.slane %v725_v20, 2  ;;  %v1018_v7 = vadd.f32 %v1016_v62, %v1012_v13  ;;  %v1017_v53 = vadd.f32 %v1015_v55, %v1011_v0 }
 0x584   :  { %v938_v42 = vadd.f32 %v937_v36, %v936_v52 }
 0x585   :  { %v727_v18 = vmax.f32 %v725_v20, %v726_v11  ;;  %v1024_v8 = vadd.f32 %v1022_v51, %v1018_v7  ;;  %v1023_v15 = vadd.f32 %v1021_v37, %v1017_v53  ;;  %v1039_v11 = vmul.f32 %v1818_v34, %v1038_v22 }
 0x586   :  { %v939_v38 = vrot.slane %v938_v42, 1  ;;  %v840_v53 = vstv %s1206_s1 }
 0x587   :  { %v728_v17 = vrot.slane %v727_v18, 1  ;;  %v1030_v12 = vadd.f32 %v1028_v1, %v1024_v8  ;;  %v1029_v10 = vadd.f32 %v1027_v23, %v1023_v15 }
 0x588   :  { %v940_v61 = vadd.f32 %v939_v38, %v938_v42 }
 0x589   :  { %v729_v27 = vmax.f32 %v727_v18, %v728_v17  ;;  %v1036_v21 = vadd.f32 %v1034_v5, %v1030_v12  ;;  %v1035_v20 = vadd.f32 %v1033_v9, %v1029_v10  ;;  %v1044_v18 = vstv %s1232_s12 }
 0x58a   :  { %v1046_v17 = vmul.f32 %v1821_v54, %v1044_v18 }
 0x58b   :  { %730 = vst [vmem:[#allocation10 + $0x4] sm:$0x1] %v729_v27  ;;  %v1042_v24 = vadd.f32 %v1040_v19, %v1036_v21  ;;  %v1041_v28 = vadd.f32 %v1039_v11, %v1035_v20  ;;  %v1045_v27 = vmul.f32 %v1824_v35, %v1044_v18 }
 0x58d   :  { %v1048_v47 = vadd.f32 %v1046_v17, %v1042_v24  ;;  %v1047_v46 = vadd.f32 %v1045_v27, %v1041_v28 }
 0x58f   :  { %v1931_v16 = vadd.f32 %v1052_v30, %v1048_v47  ;;  %v1933_v43 = vadd.f32 %v1051_v41, %v1047_v46 }
 0x591   :  { %v1056_v34 = vmul.f32 %v1554_v31, %v1931_v16  ;;  %v1055_v54 = vmul.f32 %v1554_v31, %v1933_v43 }
 0x593   :  { %v1057_v4 = vsel %vm174_vm1, %v1056_v34, 0.0 }
 0x594   :  { %v1058_v35 = vadd.f32 %v1057_v4, %v1055_v54 }
 0x596   :  { %1059 = vadd.xlane.f32.xlu0 %v1058_v35 }
 0x600   :  { %v827_v33 = vpop.xlane.xlu1 %826 }
 0x601   :  { %v828_v6 = vrot.slane %v827_v33, 4 }
 0x603   :  { %v829_v32 = vadd.f32 %v828_v6, %v827_v33 }
 0x605   :  { %v830_v58 = vrot.slane %v829_v32, 2 }
 0x607   :  { %v831_v40 = vadd.f32 %v830_v58, %v829_v32 }
 0x609   :  { %v832_v59 = vrot.slane %v831_v40, 1 }
 0x60b   :  { %v833_v44 = vadd.f32 %v832_v59, %v831_v40  ;;  %v966_v40 = vstv %s1220_s17 }
 0x60d   :  { %1258 = vpush %v833_v44  ;;  %v971_v44 = vstv %s1221_s18 }
 0x60e   :  { %1260 = vpush %v940_v61 }
 0x623   :  { %v1060_v20 = vpop.xlane.xlu0 %1059 }
 0x624   :  { %v1061_v11 = vrot.slane %v1060_v20, 4 }
 0x626   :  { %v1062_v18 = vadd.f32 %v1061_v11, %v1060_v20 }
 0x628   :  { %v1063_v24 = vrot.slane %v1062_v18, 2 }
 0x63e   :  { %s1259_s14 = spop %1258 }
 0x63f   :  { %v835_v45 = vstv %s1259_s14  ;;  %s1261_s0 = spop %1260 }
 0x640   :  { %v836_v48 = vmul.f32 0.0026041667, %v835_v45  ;;  %v942_v14 = vstv %s1261_s0 }
 0x641   :  { %v943_v50 = vmul.f32 0.0026041667, %v942_v14 }
 0x642   :  { %v838_v63 = vadd.f32 1e-05, %v836_v48 }
 0x643   :  { %v1941_v13 = vsub.f32 %v1884_v2, %v943_v50  ;;  %v1944_v62 = vsub.f32 %v1882_v57, %v943_v50 }
 0x644   :  { %1286 = vrsqrt.f32 %v838_v63 }
 0x645   :  { %v946_v0 = vmul.f32 %v1941_v13, %v1941_v13  ;;  %v947_v55 = vmul.f32 %v1944_v62, %v1944_v62 }
 0x647   :  { %v948_v49 = vmul.f32 %v1554_v31, %v946_v0  ;;  %v949_v7 = vmul.f32 %v1554_v31, %v947_v55 }
 0x649   :  { %v950_v51 = vsel %vm174_vm1, %v949_v7, 0.0 }
 0x64a   :  { %v951_v2 = vadd.f32 %v950_v51, %v948_v49 }
 0x64c   :  { %952 = vadd.xlane.f32.xlu1 %v951_v2 }
 0x64e   :  { %v1287_v57 = vpop.eup %1286 }
 0x64f   :  { %v841_v37 = vmul.f32 %v1287_v57, %v840_v53 }
 0x651   :  { %v842_v8 = vmul.f32 %v841_v37, %v1892_v39  ;;  %v843_v1 = vmul.f32 %v841_v37, %v1895_v60  ;;  %v1064_v60 = vadd.f32 %v1063_v24, %v1062_v18 }
 0x653   :  { %v846_v15 = vadd.f32 %v845_v56, %v842_v8  ;;  %v847_v23 = vadd.f32 %v845_v56, %v843_v1  ;;  %v1065_v47 = vrot.slane %v1064_v60, 1  ;;  %v1092_v1 = vstv %s1234_s20 }
 0x655   :  { %v848_v3 = vsel %vm174_vm1, %v847_v23, -inf  ;;  %v1066_v41 = vadd.f32 %v1065_v47, %v1064_v60 }
 0x656   :  { %v849_v12 = vmax.f32 %v846_v15, %v848_v3  ;;  %v1097_v3 = vstv %s1235_s21 }
 0x658   :  { %v850_v5 = vrot.slane %v849_v12, 4 }
 0x65a   :  { %v851_v10 = vmax.f32 %v849_v12, %v850_v5 }
 0x65c   :  { %v852_v9 = vrot.slane %v851_v10, 2 }
 0x65e   :  { %v853_v22 = vmax.f32 %v851_v10, %v852_v9 }
 0x660   :  { %v854_v21 = vrot.slane %v853_v22, 1 }
 0x662   :  { %v855_v19 = vmax.f32 %v853_v22, %v854_v21 }
 0x664   :  { %856 = vst [vmem:[#allocation10 + $0x5] sm:$0x1] %v855_v19 }
 0x6d9   :  { %v953_v17 = vpop.xlane.xlu1 %952 }
 0x6da   :  { %v954_v39 = vrot.slane %v953_v17, 4 }
 0x6dc   :  { %v955_v28 = vadd.f32 %v954_v39, %v953_v17 }
 0x6de   :  { %v956_v27 = vrot.slane %v955_v28, 2 }
 0x6e0   :  { %v957_v26 = vadd.f32 %v956_v27, %v955_v28 }
 0x6e2   :  { %v958_v30 = vrot.slane %v957_v26, 1 }
 0x6e4   :  { %v959_v46 = vadd.f32 %v958_v30, %v957_v26 }
 0x6e6   :  { %1262 = vpush %v959_v46 }
 0x6e7   :  { %1264 = vpush %v1066_v41 }
 0x717   :  { %s1263_s15 = spop %1262 }
 0x718   :  { %v961_v34 = vstv %s1263_s15  ;;  %s1265_s16 = spop %1264 }
 0x719   :  { %v962_v54 = vmul.f32 0.0026041667, %v961_v34  ;;  %v1068_v4 = vstv %s1265_s16 }
 0x71a   :  { %v1069_v35 = vmul.f32 0.0026041667, %v1068_v4 }
 0x71b   :  { %v964_v29 = vadd.f32 1e-05, %v962_v54 }
 0x71c   :  { %v1070_v25 = vsub.f32 %v1933_v43, %v1069_v35  ;;  %v1071_v52 = vsub.f32 %v1931_v16, %v1069_v35 }
 0x71d   :  { %1288 = vrsqrt.f32 %v964_v29 }
 0x71e   :  { %v1072_v36 = vmul.f32 %v1070_v25, %v1070_v25  ;;  %v1073_v33 = vmul.f32 %v1071_v52, %v1071_v52 }
 0x720   :  { %v1074_v6 = vmul.f32 %v1554_v31, %v1072_v36  ;;  %v1075_v32 = vmul.f32 %v1554_v31, %v1073_v33 }
 0x722   :  { %v1076_v42 = vsel %vm174_vm1, %v1075_v32, 0.0 }
 0x723   :  { %v1077_v58 = vadd.f32 %v1076_v42, %v1074_v6 }
 0x725   :  { %1078 = vadd.xlane.f32.xlu1 %v1077_v58 }
 0x727   :  { %v1289_v38 = vpop.eup %1288 }
 0x728   :  { %v967_v59 = vmul.f32 %v1289_v38, %v966_v40 }
 0x72a   :  { %v968_v43 = vmul.f32 %v967_v59, %v1941_v13  ;;  %v969_v16 = vmul.f32 %v967_v59, %v1944_v62 }
 0x72c   :  { %v972_v61 = vadd.f32 %v971_v44, %v968_v43  ;;  %v973_v45 = vadd.f32 %v971_v44, %v969_v16 }
 0x72e   :  { %v974_v48 = vsel %vm174_vm1, %v973_v45, -inf }
 0x72f   :  { %v975_v14 = vmax.f32 %v972_v61, %v974_v48 }
 0x731   :  { %v976_v50 = vrot.slane %v975_v14, 4 }
 0x733   :  { %v977_v31 = vmax.f32 %v975_v14, %v976_v50 }
 0x735   :  { %v978_v63 = vrot.slane %v977_v31, 2 }
 0x737   :  { %v979_v0 = vmax.f32 %v977_v31, %v978_v63 }
 0x739   :  { %v980_v55 = vrot.slane %v979_v0, 1 }
 0x73b   :  { %v981_v49 = vmax.f32 %v979_v0, %v980_v55 }
 0x73d   :  { %982 = vst [vmem:[#allocation10 + $0x6] sm:$0x1] %v981_v49 }
 0x7b2   :  { %v1079_v7 = vpop.xlane.xlu1 %1078 }
 0x7b3   :  { %v1080_v51 = vrot.slane %v1079_v7, 4 }
 0x7b5   :  { %v1081_v2 = vadd.f32 %v1080_v51, %v1079_v7 }
 0x7b7   :  { %v1082_v53 = vrot.slane %v1081_v2, 2 }
 0x7b9   :  { %v1083_v57 = vadd.f32 %v1082_v53, %v1081_v2 }
 0x7bb   :  { %v1084_v13 = vrot.slane %v1083_v57, 1 }
 0x7bd   :  { %v1085_v37 = vadd.f32 %v1084_v13, %v1083_v57 }
 0x7bf   :  { %1266 = vpush %v1085_v37 }
 0x7f0   :  { %s1267_s19 = spop %1266 }
 0x7f1   :  { %v1087_v62 = vstv %s1267_s19 }
 0x7f2   :  { %v1088_v56 = vmul.f32 0.0026041667, %v1087_v62 }
 0x7f4   :  { %v1090_v8 = vadd.f32 1e-05, %v1088_v56 }
 0x7f6   :  { %1290 = vrsqrt.f32 %v1090_v8 }
 0x800   :  { %v1291_v15 = vpop.eup %1290 }
 0x801   :  { %v1093_v23 = vmul.f32 %v1291_v15, %v1092_v1 }
 0x803   :  { %v1094_v12 = vmul.f32 %v1093_v23, %v1070_v25  ;;  %v1095_v5 = vmul.f32 %v1093_v23, %v1071_v52 }
 0x805   :  { %v1098_v10 = vadd.f32 %v1097_v3, %v1094_v12  ;;  %v1099_v9 = vadd.f32 %v1097_v3, %v1095_v5 }
 0x807   :  { %v1100_v22 = vsel %vm174_vm1, %v1099_v9, -inf }
 0x808   :  { %v1101_v21 = vmax.f32 %v1098_v10, %v1100_v22 }
 0x80a   :  { %v1102_v19 = vrot.slane %v1101_v21, 4 }
 0x80c   :  { %v1103_v20 = vmax.f32 %v1101_v21, %v1102_v19 }
 0x80e   :  { %v1104_v11 = vrot.slane %v1103_v20, 2 }
 0x810   :  { %v1105_v18 = vmax.f32 %v1103_v20, %v1104_v11 }
 0x812   :  { %v1106_v24 = vrot.slane %v1105_v18, 1 }
 0x814   :  { %v1107_v17 = vmax.f32 %v1105_v18, %v1106_v24 }
 0x816   :  { %1108 = vst [vmem:[#allocation10 + $0x7] sm:$0x1] %v1107_v17 }
 0x817   :  { %1385 = shalt.err (!%p1382_p13)
}
 0x818   :  { %s1386_s26 = scalar_lea.hbm %s1981_s4, 128 }
 0x819   :  { %p1387_p0 = scmp.ne.s32.totalorder %s1981_s4, %s1386_s26  ;;  %p1390_p1 = scmp.lt.u32.totalorder %s1386_s26, %s1981_s4 }
 0x81b   :  { %p1392_p2 = pnand %p1390_p1, %p1387_p0 }
 0x81d   :  { %1395 = shalt.err (!%p1392_p2)
}
 0x81e   :  { %1118 = dma.vmem_to_hbm [thread:$0]  %s1116_s23, 128, %s1981_s4, [#allocation4]  }
 0x81f   :  { %1402 = dma.done.wait [#allocation4], 128  }
 0x820   :  { %1403 = vsyncadd [#allocation4], 4294967168 }
 0x821   :  { %1122 = vsyncpa [#allocation3], 1 }
 0x822   :  { %1123 = vsyncpa [#allocation4], 1 }
 0x823   :  { %1124 = vsyncpa [#allocation5], 1 }
 0x824   :  { %1125 = vsyncpa [#allocation8], 1 }

</bundles_post_ra>
